<compile_context>
chip_gen: v7x
topology: tpu7x:2x2x1
jax: 0.10.0
libtpu: 0.0.40
codegen_flags: <defaults>
</compile_context>

<pallas_src>
import functools

import jax
import jax.numpy as jnp
import numpy as np
from jax.experimental import pallas as pl
from jax.experimental.pallas import tpu as pltpu

KSIZE = 5
PAD = KSIZE // 2


def _encoder_kernel(x_ref, m_ref, wt_ref, wbig_ref, lb_ref, tt_ref, pb_ref,
                    out_ref, xp_sc, mp_sc, *, H, W, C, Co):
    """Fused Encoder forward for one batch element (grid axis = batch).

    x_ref  : (1, H, W*C)       x, channels-last interleaved (lane = w*C + c)
    m_ref  : (1, H, W*C)       mask, same layout
    wt_ref : (25, H, W*C)      |depthwise weight|, pre-broadcast: wt[kh*5+kw, h, w*C+c] = |W_dw[c,kh,kw]|
    wbig_ref:(2*W*C, W*Co)     stacked block-diagonal Linear weight [h-half ; conf-half], bf16
    lb_ref : (H, W*Co)         Linear bias tiled over rows/lanes
    tt_ref : (H, W*C)          softplus(pc_temperature) laid out per PyTorch view(-1,C) indexing
    pb_ref : (H, W*C)          pc_bias, same layout
    out_ref: (1, H, W*Co)
    xp_sc, mp_sc : (H+4, (W+4)*C) VMEM scratch for zero-padded tiles
    """
    WC = W * C
    WPC = (W + 2 * PAD) * C

    xm = x_ref[0] * m_ref[0]                          # (H, W*C)  x * mask
    mk = m_ref[0]

    # Zero only the halo strips; the interior is fully overwritten every step.
    zrow = jnp.zeros((PAD, WPC), jnp.float32)
    zcol = jnp.zeros((H, PAD * C), jnp.float32)
    xp_sc[0:PAD, :] = zrow
    xp_sc[H + PAD:H + 2 * PAD, :] = zrow
    xp_sc[PAD:PAD + H, 0:PAD * C] = zcol
    xp_sc[PAD:PAD + H, PAD * C + WC:PAD * C + WC + PAD * C] = zcol
    mp_sc[0:PAD, :] = zrow
    mp_sc[H + PAD:H + 2 * PAD, :] = zrow
    mp_sc[PAD:PAD + H, 0:PAD * C] = zcol
    mp_sc[PAD:PAD + H, PAD * C + WC:PAD * C + WC + PAD * C] = zcol
    xp_sc[PAD:PAD + H, PAD * C:PAD * C + WC] = xm
    mp_sc[PAD:PAD + H, PAD * C:PAD * C + WC] = mk

    xp = xp_sc[...]                                   # (H+4, (W+4)*C)
    mp = mp_sc[...]

    # Hoist the kw lane shifts: 5 lane-shifted slabs per operand (instead of 25
    # misaligned slices).  Inner loop then only slices sublane rows.
    xs = [xp[:, kw * C:kw * C + WC] for kw in range(KSIZE)]   # each (H+4, W*C)
    ms = [mp[:, kw * C:kw * C + WC] for kw in range(KSIZE)]

    num = None
    den = None
    for kh in range(KSIZE):
        for kw in range(KSIZE):
            wv = wt_ref[kh * KSIZE + kw]              # (H, W*C), pre-broadcast in wrapper
            xt = xs[kw][kh:kh + H, :]
            mt = ms[kw][kh:kh + H, :]
            if num is None:
                num = xt * wv
                den = mt * wv
            else:
                num = num + xt * wv
                den = den + mt * wv

    # h = num / clamp(den, 1e-5), divide moved onto the (otherwise idle) EUP.
    h = num * pl.reciprocal(jnp.maximum(den, 1e-5), approx=True)

    # ProbabilityConverter (min_p = 0 so the final rescale is the identity); tt/pb are
    # laid out to reproduce PyTorch's denom.view(-1, C) flat-index-mod-C param indexing.
    conf = jax.nn.sigmoid((den * 0.1 + pb_ref[...]) * tt_ref[...])

    # Linear(2C -> Co) on the interleaved layout as ONE bf16 MXU matmul (K = 2*W*C):
    #   out[h, w*Co+o] = sum_c h[h,w*C+c]*Wl[o,c] + sum_c conf[h,w*C+c]*Wl[o,C+c] + b[o]
    hc = jnp.concatenate([h, conf], axis=-1).astype(jnp.bfloat16)     # (H, 2*W*C)
    out = jnp.dot(hc, wbig_ref[...], preferred_element_type=jnp.float32) + lb_ref[...]
    out_ref[0] = out


def _build_derived(conv_w, lin_w, lin_b, pc_temperature, pc_bias, H, W):
    """Parameter-derived tensors for one spatial size (built once, cached)."""
    C = conv_w.shape[0]
    Co = lin_w.shape[0]
    WC = W * C

    # |depthwise weight| pre-broadcast to (25, H, W*C): wt[kh*5+kw, h, w*C+c] = |W_dw[c,kh,kw]|
    wt = jnp.tile(jnp.abs(conv_w).transpose(1, 2, 0).reshape(KSIZE * KSIZE, 1, C),
                  (1, H, W))

    # Block-diagonal Linear weights so the 2C->Co Linear runs directly on the interleaved
    # layout, stacked [h-half ; conf-half] into one (2*W*C, W*Co) bf16 MXU operand:
    #   Wbig[w*C+c, v*Co+o] = delta(w,v) * Wl[o, c (+C)].
    eye_w = jnp.eye(W, dtype=jnp.float32)
    wbig_h = jnp.einsum('wv,co->wcvo', eye_w, lin_w[:, :C].T).reshape(WC, W * Co)
    wbig_c = jnp.einsum('wv,co->wcvo', eye_w, lin_w[:, C:].T).reshape(WC, W * Co)
    wbig = jnp.concatenate([wbig_h, wbig_c], axis=0).astype(jnp.bfloat16)   # (2*W*C, W*Co)

    lb = jnp.tile(lin_b[None, :], (H, W))                                   # (H, W*Co)

    # ProbabilityConverter params laid out exactly like PyTorch's denom.view(-1, C):
    # param index at (b, c, h, w) = (c*H*W + h*W + w) % C  (batch term drops mod C),
    # placed at row h, lane w*C + c.
    c_idx = jnp.arange(C)[None, None, :]
    h_idx = jnp.arange(H)[:, None, None]
    w_idx = jnp.arange(W)[None, :, None]
    pidx = (c_idx * (H * W) + h_idx * W + w_idx) % C                        # (H, W, C)
    tt = jax.nn.softplus(pc_temperature)[pidx].reshape(H, WC)               # (H, W*C)
    pb = pc_bias[pidx].reshape(H, WC)                                       # (H, W*C)

    return wt, wbig, lb, tt, pb


@functools.partial(jax.jit, static_argnames=("H", "W", "C", "Co"))
def _encoder_forward(x, mask, wt, wbig, lb, tt, pb, *, H, W, C, Co):
    """x, mask: (B, C, H, W) float32 (PyTorch NCHW interface) -> (B, H, W, Co)."""
    B = x.shape[0]

    # NCHW -> NHWC -> lane-interleaved (B, H, W*C)  (lane index = w*C + c).
    x_il = jnp.transpose(x, (0, 2, 3, 1)).reshape(B, H, W * C)
    m_il = jnp.transpose(mask, (0, 2, 3, 1)).reshape(B, H, W * C)

    kernel = functools.partial(_encoder_kernel, H=H, W=W, C=C, Co=Co)

    out_il = pl.pallas_call(
        kernel,
        out_shape=jax.ShapeDtypeStruct((B, H, W * Co), jnp.float32),
        grid_spec=pltpu.PrefetchScalarGridSpec(
            num_scalar_prefetch=0,
            grid=(B,),
            in_specs=[
                pl.BlockSpec((1, H, W * C), lambda b: (b, 0, 0)),
                pl.BlockSpec((1, H, W * C), lambda b: (b, 0, 0)),
                pl.BlockSpec((KSIZE * KSIZE, H, W * C), lambda b: (0, 0, 0)),
                pl.BlockSpec((2 * W * C, W * Co), lambda b: (0, 0)),
                pl.BlockSpec((H, W * Co), lambda b: (0, 0)),
                pl.BlockSpec((H, W * C), lambda b: (0, 0)),
                pl.BlockSpec((H, W * C), lambda b: (0, 0)),
            ],
            out_specs=pl.BlockSpec((1, H, W * Co), lambda b: (b, 0, 0)),
            scratch_shapes=[
                pltpu.VMEM((H + 2 * PAD, (W + 2 * PAD) * C), jnp.float32),
                pltpu.VMEM((H + 2 * PAD, (W + 2 * PAD) * C), jnp.float32),
            ],
        ),
        compiler_params=pltpu.CompilerParams(
            dimension_semantics=("parallel",)),
    )(x_il, m_il, wt, wbig, lb, tt, pb)

    return out_il.reshape(B, H, W, Co)


class EncoderPallas:
    """Pallas port of CONVCNP Encoder(in_channels, out_channels)."""

    def __init__(self, in_channels, out_channels, seed=0):
        C, Co = in_channels, out_channels
        self.C, self.Co = C, Co
        key = jax.random.PRNGKey(seed)
        kcw, klw, klb = jax.random.split(key, 3)

        # Depthwise AbsConv2d(C, C, groups=C, k=5, bias=False): weight (C, 1, 5, 5)
        # stored here as (C, 5, 5); |.| is applied in the forward pass (AbsConv).
        bound_c = 1.0 / np.sqrt(KSIZE * KSIZE)        # fan_in = (C/groups) * k * k = 25
        self.conv_w = jax.random.uniform(kcw, (C, KSIZE, KSIZE), jnp.float32,
                                         -bound_c, bound_c)

        # nn.Linear(2C, Co)
        bound_l = 1.0 / np.sqrt(2 * C)
        self.lin_w = jax.random.uniform(klw, (Co, 2 * C), jnp.float32, -bound_l, bound_l)
        self.lin_b = jax.random.uniform(klb, (Co,), jnp.float32, -bound_l, bound_l)

        # ProbabilityConverter(trainable_dim=C) defaults:
        #   temperature = 1.0; bias = -(log((1-p)/p)/T0 + x0) with p=0.5, x0=0  ->  0.0
        self.pc_temperature = jnp.ones((C,), jnp.float32)
        p0, t0, x0 = 0.5, 1.0, 0.0
        self.pc_bias = jnp.full((C,), -(np.log((1.0 - p0) / p0) / t0 + x0), jnp.float32)

        # Parameter-derived tensors cached per spatial size (built once, not per forward).
        self._derived_cache = {}

    def _derived(self, H, W):
        key = (H, W)
        if key not in self._derived_cache:
            d = _build_derived(self.conv_w, self.lin_w, self.lin_b,
                               self.pc_temperature, self.pc_bias, H, W)
            self._derived_cache[key] = tuple(jax.block_until_ready(a) for a in d)
        return self._derived_cache[key]

    def __call__(self, x, mask):
        B, C, H, W = x.shape
        assert C == self.C
        wt, wbig, lb, tt, pb = self._derived(H, W)
        return _encoder_forward(x, mask, wt, wbig, lb, tt, pb,
                                H=H, W=W, C=C, Co=self.Co)


def _ref_encoder(x, mask, conv_w, lin_w, lin_b, pc_temperature, pc_bias):
    """Pure-JAX reference of Encoder.forward (NCHW in, (B, H, W, Co) out)."""
    B, C, H, W = x.shape
    w_abs = jnp.abs(conv_w)[:, None, :, :]            # (C, 1, 5, 5) OIHW, groups=C
    conv = lambda a: jax.lax.conv_general_dilated(
        a, w_abs, window_strides=(1, 1), padding="SAME",
        dimension_numbers=("NCHW", "OIHW", "NCHW"),
        feature_group_count=C, precision=jax.lax.Precision.HIGHEST)
    num = conv(x * mask)
    den = conv(mask)
    h = num / jnp.maximum(den, 1e-5)
    # ProbabilityConverter applied exactly as PyTorch does (view(-1, C)).
    flat = den.reshape(-1, C) * 0.1
    conf = jax.nn.sigmoid((flat + pc_bias) * jax.nn.softplus(pc_temperature))
    conf = conf.reshape(B, C, H, W)
    hcat = jnp.concatenate([h, conf], axis=1)          # (B, 2C, H, W)
    hlast = jnp.transpose(hcat, (0, 2, 3, 1))          # (B, H, W, 2C)
    return jnp.einsum('bhwk,ok->bhwo', hlast, lin_w,
                      precision=jax.lax.Precision.HIGHEST) + lin_b


if __name__ == "__main__":
    B, C, H, W = 2, 4, 16, 16
    Co = 8

    key = jax.random.PRNGKey(0)
    kx, km = jax.random.split(key, 2)
    x = jax.random.normal(kx, (B, C, H, W), jnp.float32)
    mask = (jax.random.uniform(km, (B, 1, H, W)) < 0.5).astype(jnp.float32)
    mask = jnp.broadcast_to(mask, (B, C, H, W))

    enc = EncoderPallas(in_channels=C, out_channels=Co, seed=0)
    out = jax.block_until_ready(enc(x, mask))          # first call: build cache + compile
    out = jax.block_until_ready(enc(x, mask))          # steady-state call (cache hit)
    assert out.shape == (B, H, W, Co)

    ref = _ref_encoder(x, mask, enc.conv_w, enc.lin_w, enc.lin_b,
                       enc.pc_temperature, enc.pc_bias)
    # Tolerance covers bf16 MXU operands + EUP approx reciprocal vs the f32 HIGHEST reference.
    np.testing.assert_allclose(np.asarray(out), np.asarray(ref),
                               rtol=2e-2, atol=2e-2)

    print("KERNEL_OK")
</pallas_src>

<mosaic_0001>
module attributes {stable_mosaic.version = 11 : i64} {
  func.func @_encoder_kernel(%arg0: i32, %arg1: memref<1x16x64xf32, #tpu.memory_space<vmem>>, %arg2: memref<1x16x64xf32, #tpu.memory_space<vmem>>, %arg3: memref<25x16x64xf32, #tpu.memory_space<vmem>>, %arg4: memref<128x128xbf16, #tpu.memory_space<vmem>>, %arg5: memref<16x128xf32, #tpu.memory_space<vmem>>, %arg6: memref<16x64xf32, #tpu.memory_space<vmem>>, %arg7: memref<16x64xf32, #tpu.memory_space<vmem>>, %arg8: memref<1x16x128xf32, #tpu.memory_space<vmem>>, %arg9: memref<20x80xf32, #tpu.memory_space<vmem>>, %arg10: memref<20x80xf32, #tpu.memory_space<vmem>>) attributes {dimension_semantics = [#tpu.dimension_semantics<parallel>], iteration_bounds = array<i64: 2>, scalar_prefetch = 0 : i64, scratch_operands = 2 : i64, tpu.core_type = #tpu.core_type<tc>, window_params = [{transform_indices = @transform_0, window_bounds = array<i64: 1, 16, 64>}, {transform_indices = @transform_1, window_bounds = array<i64: 1, 16, 64>}, {pipeline_mode = #tpu.pipeline_mode<synchronous>, transform_indices = @transform_2, window_bounds = array<i64: 25, 16, 64>}, {pipeline_mode = #tpu.pipeline_mode<synchronous>, transform_indices = @transform_3, window_bounds = array<i64: 128, 128>}, {pipeline_mode = #tpu.pipeline_mode<synchronous>, transform_indices = @transform_4, window_bounds = array<i64: 16, 128>}, {pipeline_mode = #tpu.pipeline_mode<synchronous>, transform_indices = @transform_5, window_bounds = array<i64: 16, 64>}, {pipeline_mode = #tpu.pipeline_mode<synchronous>, transform_indices = @transform_6, window_bounds = array<i64: 16, 64>}, {transform_indices = @transform_7, window_bounds = array<i64: 1, 16, 128>}]} {
    %c0 = arith.constant 0 : index
    %c0_0 = arith.constant 0 : index
    %c0_1 = arith.constant 0 : index
    %0 = vector.load %arg1[%c0, %c0_0, %c0_1] : memref<1x16x64xf32, #tpu.memory_space<vmem>>, vector<1x16x64xf32>
    %1 = vector.shape_cast %0 : vector<1x16x64xf32> to vector<16x64xf32>
    %c0_2 = arith.constant 0 : index
    %c0_3 = arith.constant 0 : index
    %c0_4 = arith.constant 0 : index
    %2 = vector.load %arg2[%c0_2, %c0_3, %c0_4] : memref<1x16x64xf32, #tpu.memory_space<vmem>>, vector<1x16x64xf32>
    %3 = vector.shape_cast %2 : vector<1x16x64xf32> to vector<16x64xf32>
    %4 = arith.mulf %1, %3 : vector<16x64xf32>
    %c0_5 = arith.constant 0 : index
    %c0_6 = arith.constant 0 : index
    %c0_7 = arith.constant 0 : index
    %5 = vector.load %arg2[%c0_5, %c0_6, %c0_7] : memref<1x16x64xf32, #tpu.memory_space<vmem>>, vector<1x16x64xf32>
    %6 = vector.shape_cast %5 : vector<1x16x64xf32> to vector<16x64xf32>
    %cst = arith.constant 0.000000e+00 : f32
    %7 = vector.broadcast %cst : f32 to vector<2x80xf32>
    %cst_8 = arith.constant 0.000000e+00 : f32
    %8 = vector.broadcast %cst_8 : f32 to vector<16x8xf32>
    %c0_9 = arith.constant 0 : index
    %c0_10 = arith.constant 0 : index
    %9 = vector.load %arg9[%c0_9, %c0_10] : memref<20x80xf32, #tpu.memory_space<vmem>>, vector<2x80xf32>
    tpu.vector_store %arg9[%c0_9, %c0_10], %7 {strides = array<i32>} : memref<20x80xf32, #tpu.memory_space<vmem>>, vector<2x80xf32>,
    %c18 = arith.constant 18 : index
    %c0_11 = arith.constant 0 : index
    %10 = vector.load %arg9[%c18, %c0_11] : memref<20x80xf32, #tpu.memory_space<vmem>>, vector<2x80xf32>
    tpu.vector_store %arg9[%c18, %c0_11], %7 {strides = array<i32>} : memref<20x80xf32, #tpu.memory_space<vmem>>, vector<2x80xf32>,
    %c2 = arith.constant 2 : index
    %c0_12 = arith.constant 0 : index
    %11 = vector.load %arg9[%c2, %c0_12] : memref<20x80xf32, #tpu.memory_space<vmem>>, vector<16x8xf32>
    tpu.vector_store %arg9[%c2, %c0_12], %8 {strides = array<i32>} : memref<20x80xf32, #tpu.memory_space<vmem>>, vector<16x8xf32>,
    %c2_13 = arith.constant 2 : index
    %c72 = arith.constant 72 : index
    %12 = vector.load %arg9[%c2_13, %c72] : memref<20x80xf32, #tpu.memory_space<vmem>>, vector<16x8xf32>
    tpu.vector_store %arg9[%c2_13, %c72], %8 {strides = array<i32>} : memref<20x80xf32, #tpu.memory_space<vmem>>, vector<16x8xf32>,
    %c0_14 = arith.constant 0 : index
    %c0_15 = arith.constant 0 : index
    %13 = vector.load %arg10[%c0_14, %c0_15] : memref<20x80xf32, #tpu.memory_space<vmem>>, vector<2x80xf32>
    tpu.vector_store %arg10[%c0_14, %c0_15], %7 {strides = array<i32>} : memref<20x80xf32, #tpu.memory_space<vmem>>, vector<2x80xf32>,
    %c18_16 = arith.constant 18 : index
    %c0_17 = arith.constant 0 : index
    %14 = vector.load %arg10[%c18_16, %c0_17] : memref<20x80xf32, #tpu.memory_space<vmem>>, vector<2x80xf32>
    tpu.vector_store %arg10[%c18_16, %c0_17], %7 {strides = array<i32>} : memref<20x80xf32, #tpu.memory_space<vmem>>, vector<2x80xf32>,
    %c2_18 = arith.constant 2 : index
    %c0_19 = arith.constant 0 : index
    %15 = vector.load %arg10[%c2_18, %c0_19] : memref<20x80xf32, #tpu.memory_space<vmem>>, vector<16x8xf32>
    tpu.vector_store %arg10[%c2_18, %c0_19], %8 {strides = array<i32>} : memref<20x80xf32, #tpu.memory_space<vmem>>, vector<16x8xf32>,
    %c2_20 = arith.constant 2 : index
    %c72_21 = arith.constant 72 : index
    %16 = vector.load %arg10[%c2_20, %c72_21] : memref<20x80xf32, #tpu.memory_space<vmem>>, vector<16x8xf32>
    tpu.vector_store %arg10[%c2_20, %c72_21], %8 {strides = array<i32>} : memref<20x80xf32, #tpu.memory_space<vmem>>, vector<16x8xf32>,
    %c2_22 = arith.constant 2 : index
    %c8 = arith.constant 8 : index
    %17 = vector.load %arg9[%c2_22, %c8] : memref<20x80xf32, #tpu.memory_space<vmem>>, vector<16x64xf32>
    tpu.vector_store %arg9[%c2_22, %c8], %4 {strides = array<i32>} : memref<20x80xf32, #tpu.memory_space<vmem>>, vector<16x64xf32>,
    %c2_23 = arith.constant 2 : index
    %c8_24 = arith.constant 8 : index
    %18 = vector.load %arg10[%c2_23, %c8_24] : memref<20x80xf32, #tpu.memory_space<vmem>>, vector<16x64xf32>
    tpu.vector_store %arg10[%c2_23, %c8_24], %6 {strides = array<i32>} : memref<20x80xf32, #tpu.memory_space<vmem>>, vector<16x64xf32>,
    %c0_25 = arith.constant 0 : index
    %c0_26 = arith.constant 0 : index
    %19 = vector.load %arg9[%c0_25, %c0_26] : memref<20x80xf32, #tpu.memory_space<vmem>>, vector<20x80xf32>
    %c0_27 = arith.constant 0 : index
    %c0_28 = arith.constant 0 : index
    %20 = vector.load %arg10[%c0_27, %c0_28] : memref<20x80xf32, #tpu.memory_space<vmem>>, vector<20x80xf32>
    %21 = vector.extract_strided_slice %19 {offsets = [0, 0], sizes = [20, 64], strides = [1, 1]} : vector<20x80xf32> to vector<20x64xf32>
    %22 = vector.extract_strided_slice %19 {offsets = [0, 4], sizes = [20, 64], strides = [1, 1]} : vector<20x80xf32> to vector<20x64xf32>
    %23 = vector.extract_strided_slice %19 {offsets = [0, 8], sizes = [20, 64], strides = [1, 1]} : vector<20x80xf32> to vector<20x64xf32>
    %24 = vector.extract_strided_slice %19 {offsets = [0, 12], sizes = [20, 64], strides = [1, 1]} : vector<20x80xf32> to vector<20x64xf32>
    %25 = vector.extract_strided_slice %19 {offsets = [0, 16], sizes = [20, 64], strides = [1, 1]} : vector<20x80xf32> to vector<20x64xf32>
    %26 = vector.extract_strided_slice %20 {offsets = [0, 0], sizes = [20, 64], strides = [1, 1]} : vector<20x80xf32> to vector<20x64xf32>
    %27 = vector.extract_strided_slice %20 {offsets = [0, 4], sizes = [20, 64], strides = [1, 1]} : vector<20x80xf32> to vector<20x64xf32>
    %28 = vector.extract_strided_slice %20 {offsets = [0, 8], sizes = [20, 64], strides = [1, 1]} : vector<20x80xf32> to vector<20x64xf32>
    %29 = vector.extract_strided_slice %20 {offsets = [0, 12], sizes = [20, 64], strides = [1, 1]} : vector<20x80xf32> to vector<20x64xf32>
    %30 = vector.extract_strided_slice %20 {offsets = [0, 16], sizes = [20, 64], strides = [1, 1]} : vector<20x80xf32> to vector<20x64xf32>
    %c0_29 = arith.constant 0 : index
    %c0_30 = arith.constant 0 : index
    %c0_31 = arith.constant 0 : index
    %31 = vector.load %arg3[%c0_29, %c0_30, %c0_31] : memref<25x16x64xf32, #tpu.memory_space<vmem>>, vector<1x16x64xf32>
    %32 = vector.shape_cast %31 : vector<1x16x64xf32> to vector<16x64xf32>
    %33 = vector.extract_strided_slice %21 {offsets = [0, 0], sizes = [16, 64], strides = [1, 1]} : vector<20x64xf32> to vector<16x64xf32>
    %34 = vector.extract_strided_slice %26 {offsets = [0, 0], sizes = [16, 64], strides = [1, 1]} : vector<20x64xf32> to vector<16x64xf32>
    %35 = arith.mulf %33, %32 : vector<16x64xf32>
    %36 = arith.mulf %34, %32 : vector<16x64xf32>
    %c1 = arith.constant 1 : index
    %c0_32 = arith.constant 0 : index
    %c0_33 = arith.constant 0 : index
    %37 = vector.load %arg3[%c1, %c0_32, %c0_33] : memref<25x16x64xf32, #tpu.memory_space<vmem>>, vector<1x16x64xf32>
    %38 = vector.shape_cast %37 : vector<1x16x64xf32> to vector<16x64xf32>
    %39 = vector.extract_strided_slice %22 {offsets = [0, 0], sizes = [16, 64], strides = [1, 1]} : vector<20x64xf32> to vector<16x64xf32>
    %40 = vector.extract_strided_slice %27 {offsets = [0, 0], sizes = [16, 64], strides = [1, 1]} : vector<20x64xf32> to vector<16x64xf32>
    %41 = arith.mulf %39, %38 : vector<16x64xf32>
    %42 = arith.addf %35, %41 : vector<16x64xf32>
    %43 = arith.mulf %40, %38 : vector<16x64xf32>
    %44 = arith.addf %36, %43 : vector<16x64xf32>
    %c2_34 = arith.constant 2 : index
    %c0_35 = arith.constant 0 : index
    %c0_36 = arith.constant 0 : index
    %45 = vector.load %arg3[%c2_34, %c0_35, %c0_36] : memref<25x16x64xf32, #tpu.memory_space<vmem>>, vector<1x16x64xf32>
    %46 = vector.shape_cast %45 : vector<1x16x64xf32> to vector<16x64xf32>
    %47 = vector.extract_strided_slice %23 {offsets = [0, 0], sizes = [16, 64], strides = [1, 1]} : vector<20x64xf32> to vector<16x64xf32>
    %48 = vector.extract_strided_slice %28 {offsets = [0, 0], sizes = [16, 64], strides = [1, 1]} : vector<20x64xf32> to vector<16x64xf32>
    %49 = arith.mulf %47, %46 : vector<16x64xf32>
    %50 = arith.addf %42, %49 : vector<16x64xf32>
    %51 = arith.mulf %48, %46 : vector<16x64xf32>
    %52 = arith.addf %44, %51 : vector<16x64xf32>
    %c3 = arith.constant 3 : index
    %c0_37 = arith.constant 0 : index
    %c0_38 = arith.constant 0 : index
    %53 = vector.load %arg3[%c3, %c0_37, %c0_38] : memref<25x16x64xf32, #tpu.memory_space<vmem>>, vector<1x16x64xf32>
    %54 = vector.shape_cast %53 : vector<1x16x64xf32> to vector<16x64xf32>
    %55 = vector.extract_strided_slice %24 {offsets = [0, 0], sizes = [16, 64], strides = [1, 1]} : vector<20x64xf32> to vector<16x64xf32>
    %56 = vector.extract_strided_slice %29 {offsets = [0, 0], sizes = [16, 64], strides = [1, 1]} : vector<20x64xf32> to vector<16x64xf32>
    %57 = arith.mulf %55, %54 : vector<16x64xf32>
    %58 = arith.addf %50, %57 : vector<16x64xf32>
    %59 = arith.mulf %56, %54 : vector<16x64xf32>
    %60 = arith.addf %52, %59 : vector<16x64xf32>
    %c4 = arith.constant 4 : index
    %c0_39 = arith.constant 0 : index
    %c0_40 = arith.constant 0 : index
    %61 = vector.load %arg3[%c4, %c0_39, %c0_40] : memref<25x16x64xf32, #tpu.memory_space<vmem>>, vector<1x16x64xf32>
    %62 = vector.shape_cast %61 : vector<1x16x64xf32> to vector<16x64xf32>
    %63 = vector.extract_strided_slice %25 {offsets = [0, 0], sizes = [16, 64], strides = [1, 1]} : vector<20x64xf32> to vector<16x64xf32>
    %64 = vector.extract_strided_slice %30 {offsets = [0, 0], sizes = [16, 64], strides = [1, 1]} : vector<20x64xf32> to vector<16x64xf32>
    %65 = arith.mulf %63, %62 : vector<16x64xf32>
    %66 = arith.addf %58, %65 : vector<16x64xf32>
    %67 = arith.mulf %64, %62 : vector<16x64xf32>
    %68 = arith.addf %60, %67 : vector<16x64xf32>
    %c5 = arith.constant 5 : index
    %c0_41 = arith.constant 0 : index
    %c0_42 = arith.constant 0 : index
    %69 = vector.load %arg3[%c5, %c0_41, %c0_42] : memref<25x16x64xf32, #tpu.memory_space<vmem>>, vector<1x16x64xf32>
    %70 = vector.shape_cast %69 : vector<1x16x64xf32> to vector<16x64xf32>
    %71 = vector.extract_strided_slice %21 {offsets = [1, 0], sizes = [16, 64], strides = [1, 1]} : vector<20x64xf32> to vector<16x64xf32>
    %72 = vector.extract_strided_slice %26 {offsets = [1, 0], sizes = [16, 64], strides = [1, 1]} : vector<20x64xf32> to vector<16x64xf32>
    %73 = arith.mulf %71, %70 : vector<16x64xf32>
    %74 = arith.addf %66, %73 : vector<16x64xf32>
    %75 = arith.mulf %72, %70 : vector<16x64xf32>
    %76 = arith.addf %68, %75 : vector<16x64xf32>
    %c6 = arith.constant 6 : index
    %c0_43 = arith.constant 0 : index
    %c0_44 = arith.constant 0 : index
    %77 = vector.load %arg3[%c6, %c0_43, %c0_44] : memref<25x16x64xf32, #tpu.memory_space<vmem>>, vector<1x16x64xf32>
    %78 = vector.shape_cast %77 : vector<1x16x64xf32> to vector<16x64xf32>
    %79 = vector.extract_strided_slice %22 {offsets = [1, 0], sizes = [16, 64], strides = [1, 1]} : vector<20x64xf32> to vector<16x64xf32>
    %80 = vector.extract_strided_slice %27 {offsets = [1, 0], sizes = [16, 64], strides = [1, 1]} : vector<20x64xf32> to vector<16x64xf32>
    %81 = arith.mulf %79, %78 : vector<16x64xf32>
    %82 = arith.addf %74, %81 : vector<16x64xf32>
    %83 = arith.mulf %80, %78 : vector<16x64xf32>
    %84 = arith.addf %76, %83 : vector<16x64xf32>
    %c7 = arith.constant 7 : index
    %c0_45 = arith.constant 0 : index
    %c0_46 = arith.constant 0 : index
    %85 = vector.load %arg3[%c7, %c0_45, %c0_46] : memref<25x16x64xf32, #tpu.memory_space<vmem>>, vector<1x16x64xf32>
    %86 = vector.shape_cast %85 : vector<1x16x64xf32> to vector<16x64xf32>
    %87 = vector.extract_strided_slice %23 {offsets = [1, 0], sizes = [16, 64], strides = [1, 1]} : vector<20x64xf32> to vector<16x64xf32>
    %88 = vector.extract_strided_slice %28 {offsets = [1, 0], sizes = [16, 64], strides = [1, 1]} : vector<20x64xf32> to vector<16x64xf32>
    %89 = arith.mulf %87, %86 : vector<16x64xf32>
    %90 = arith.addf %82, %89 : vector<16x64xf32>
    %91 = arith.mulf %88, %86 : vector<16x64xf32>
    %92 = arith.addf %84, %91 : vector<16x64xf32>
    %c8_47 = arith.constant 8 : index
    %c0_48 = arith.constant 0 : index
    %c0_49 = arith.constant 0 : index
    %93 = vector.load %arg3[%c8_47, %c0_48, %c0_49] : memref<25x16x64xf32, #tpu.memory_space<vmem>>, vector<1x16x64xf32>
    %94 = vector.shape_cast %93 : vector<1x16x64xf32> to vector<16x64xf32>
    %95 = vector.extract_strided_slice %24 {offsets = [1, 0], sizes = [16, 64], strides = [1, 1]} : vector<20x64xf32> to vector<16x64xf32>
    %96 = vector.extract_strided_slice %29 {offsets = [1, 0], sizes = [16, 64], strides = [1, 1]} : vector<20x64xf32> to vector<16x64xf32>
    %97 = arith.mulf %95, %94 : vector<16x64xf32>
    %98 = arith.addf %90, %97 : vector<16x64xf32>
    %99 = arith.mulf %96, %94 : vector<16x64xf32>
    %100 = arith.addf %92, %99 : vector<16x64xf32>
    %c9 = arith.constant 9 : index
    %c0_50 = arith.constant 0 : index
    %c0_51 = arith.constant 0 : index
    %101 = vector.load %arg3[%c9, %c0_50, %c0_51] : memref<25x16x64xf32, #tpu.memory_space<vmem>>, vector<1x16x64xf32>
    %102 = vector.shape_cast %101 : vector<1x16x64xf32> to vector<16x64xf32>
    %103 = vector.extract_strided_slice %25 {offsets = [1, 0], sizes = [16, 64], strides = [1, 1]} : vector<20x64xf32> to vector<16x64xf32>
    %104 = vector.extract_strided_slice %30 {offsets = [1, 0], sizes = [16, 64], strides = [1, 1]} : vector<20x64xf32> to vector<16x64xf32>
    %105 = arith.mulf %103, %102 : vector<16x64xf32>
    %106 = arith.addf %98, %105 : vector<16x64xf32>
    %107 = arith.mulf %104, %102 : vector<16x64xf32>
    %108 = arith.addf %100, %107 : vector<16x64xf32>
    %c10 = arith.constant 10 : index
    %c0_52 = arith.constant 0 : index
    %c0_53 = arith.constant 0 : index
    %109 = vector.load %arg3[%c10, %c0_52, %c0_53] : memref<25x16x64xf32, #tpu.memory_space<vmem>>, vector<1x16x64xf32>
    %110 = vector.shape_cast %109 : vector<1x16x64xf32> to vector<16x64xf32>
    %111 = vector.extract_strided_slice %21 {offsets = [2, 0], sizes = [16, 64], strides = [1, 1]} : vector<20x64xf32> to vector<16x64xf32>
    %112 = vector.extract_strided_slice %26 {offsets = [2, 0], sizes = [16, 64], strides = [1, 1]} : vector<20x64xf32> to vector<16x64xf32>
    %113 = arith.mulf %111, %110 : vector<16x64xf32>
    %114 = arith.addf %106, %113 : vector<16x64xf32>
    %115 = arith.mulf %112, %110 : vector<16x64xf32>
    %116 = arith.addf %108, %115 : vector<16x64xf32>
    %c11 = arith.constant 11 : index
    %c0_54 = arith.constant 0 : index
    %c0_55 = arith.constant 0 : index
    %117 = vector.load %arg3[%c11, %c0_54, %c0_55] : memref<25x16x64xf32, #tpu.memory_space<vmem>>, vector<1x16x64xf32>
    %118 = vector.shape_cast %117 : vector<1x16x64xf32> to vector<16x64xf32>
    %119 = vector.extract_strided_slice %22 {offsets = [2, 0], sizes = [16, 64], strides = [1, 1]} : vector<20x64xf32> to vector<16x64xf32>
    %120 = vector.extract_strided_slice %27 {offsets = [2, 0], sizes = [16, 64], strides = [1, 1]} : vector<20x64xf32> to vector<16x64xf32>
    %121 = arith.mulf %119, %118 : vector<16x64xf32>
    %122 = arith.addf %114, %121 : vector<16x64xf32>
    %123 = arith.mulf %120, %118 : vector<16x64xf32>
    %124 = arith.addf %116, %123 : vector<16x64xf32>
    %c12 = arith.constant 12 : index
    %c0_56 = arith.constant 0 : index
    %c0_57 = arith.constant 0 : index
    %125 = vector.load %arg3[%c12, %c0_56, %c0_57] : memref<25x16x64xf32, #tpu.memory_space<vmem>>, vector<1x16x64xf32>
    %126 = vector.shape_cast %125 : vector<1x16x64xf32> to vector<16x64xf32>
    %127 = vector.extract_strided_slice %23 {offsets = [2, 0], sizes = [16, 64], strides = [1, 1]} : vector<20x64xf32> to vector<16x64xf32>
    %128 = vector.extract_strided_slice %28 {offsets = [2, 0], sizes = [16, 64], strides = [1, 1]} : vector<20x64xf32> to vector<16x64xf32>
    %129 = arith.mulf %127, %126 : vector<16x64xf32>
    %130 = arith.addf %122, %129 : vector<16x64xf32>
    %131 = arith.mulf %128, %126 : vector<16x64xf32>
    %132 = arith.addf %124, %131 : vector<16x64xf32>
    %c13 = arith.constant 13 : index
    %c0_58 = arith.constant 0 : index
    %c0_59 = arith.constant 0 : index
    %133 = vector.load %arg3[%c13, %c0_58, %c0_59] : memref<25x16x64xf32, #tpu.memory_space<vmem>>, vector<1x16x64xf32>
    %134 = vector.shape_cast %133 : vector<1x16x64xf32> to vector<16x64xf32>
    %135 = vector.extract_strided_slice %24 {offsets = [2, 0], sizes = [16, 64], strides = [1, 1]} : vector<20x64xf32> to vector<16x64xf32>
    %136 = vector.extract_strided_slice %29 {offsets = [2, 0], sizes = [16, 64], strides = [1, 1]} : vector<20x64xf32> to vector<16x64xf32>
    %137 = arith.mulf %135, %134 : vector<16x64xf32>
    %138 = arith.addf %130, %137 : vector<16x64xf32>
    %139 = arith.mulf %136, %134 : vector<16x64xf32>
    %140 = arith.addf %132, %139 : vector<16x64xf32>
    %c14 = arith.constant 14 : index
    %c0_60 = arith.constant 0 : index
    %c0_61 = arith.constant 0 : index
    %141 = vector.load %arg3[%c14, %c0_60, %c0_61] : memref<25x16x64xf32, #tpu.memory_space<vmem>>, vector<1x16x64xf32>
    %142 = vector.shape_cast %141 : vector<1x16x64xf32> to vector<16x64xf32>
    %143 = vector.extract_strided_slice %25 {offsets = [2, 0], sizes = [16, 64], strides = [1, 1]} : vector<20x64xf32> to vector<16x64xf32>
    %144 = vector.extract_strided_slice %30 {offsets = [2, 0], sizes = [16, 64], strides = [1, 1]} : vector<20x64xf32> to vector<16x64xf32>
    %145 = arith.mulf %143, %142 : vector<16x64xf32>
    %146 = arith.addf %138, %145 : vector<16x64xf32>
    %147 = arith.mulf %144, %142 : vector<16x64xf32>
    %148 = arith.addf %140, %147 : vector<16x64xf32>
    %c15 = arith.constant 15 : index
    %c0_62 = arith.constant 0 : index
    %c0_63 = arith.constant 0 : index
    %149 = vector.load %arg3[%c15, %c0_62, %c0_63] : memref<25x16x64xf32, #tpu.memory_space<vmem>>, vector<1x16x64xf32>
    %150 = vector.shape_cast %149 : vector<1x16x64xf32> to vector<16x64xf32>
    %151 = vector.extract_strided_slice %21 {offsets = [3, 0], sizes = [16, 64], strides = [1, 1]} : vector<20x64xf32> to vector<16x64xf32>
    %152 = vector.extract_strided_slice %26 {offsets = [3, 0], sizes = [16, 64], strides = [1, 1]} : vector<20x64xf32> to vector<16x64xf32>
    %153 = arith.mulf %151, %150 : vector<16x64xf32>
    %154 = arith.addf %146, %153 : vector<16x64xf32>
    %155 = arith.mulf %152, %150 : vector<16x64xf32>
    %156 = arith.addf %148, %155 : vector<16x64xf32>
    %c16 = arith.constant 16 : index
    %c0_64 = arith.constant 0 : index
    %c0_65 = arith.constant 0 : index
    %157 = vector.load %arg3[%c16, %c0_64, %c0_65] : memref<25x16x64xf32, #tpu.memory_space<vmem>>, vector<1x16x64xf32>
    %158 = vector.shape_cast %157 : vector<1x16x64xf32> to vector<16x64xf32>
    %159 = vector.extract_strided_slice %22 {offsets = [3, 0], sizes = [16, 64], strides = [1, 1]} : vector<20x64xf32> to vector<16x64xf32>
    %160 = vector.extract_strided_slice %27 {offsets = [3, 0], sizes = [16, 64], strides = [1, 1]} : vector<20x64xf32> to vector<16x64xf32>
    %161 = arith.mulf %159, %158 : vector<16x64xf32>
    %162 = arith.addf %154, %161 : vector<16x64xf32>
    %163 = arith.mulf %160, %158 : vector<16x64xf32>
    %164 = arith.addf %156, %163 : vector<16x64xf32>
    %c17 = arith.constant 17 : index
    %c0_66 = arith.constant 0 : index
    %c0_67 = arith.constant 0 : index
    %165 = vector.load %arg3[%c17, %c0_66, %c0_67] : memref<25x16x64xf32, #tpu.memory_space<vmem>>, vector<1x16x64xf32>
    %166 = vector.shape_cast %165 : vector<1x16x64xf32> to vector<16x64xf32>
    %167 = vector.extract_strided_slice %23 {offsets = [3, 0], sizes = [16, 64], strides = [1, 1]} : vector<20x64xf32> to vector<16x64xf32>
    %168 = vector.extract_strided_slice %28 {offsets = [3, 0], sizes = [16, 64], strides = [1, 1]} : vector<20x64xf32> to vector<16x64xf32>
    %169 = arith.mulf %167, %166 : vector<16x64xf32>
    %170 = arith.addf %162, %169 : vector<16x64xf32>
    %171 = arith.mulf %168, %166 : vector<16x64xf32>
    %172 = arith.addf %164, %171 : vector<16x64xf32>
    %c18_68 = arith.constant 18 : index
    %c0_69 = arith.constant 0 : index
    %c0_70 = arith.constant 0 : index
    %173 = vector.load %arg3[%c18_68, %c0_69, %c0_70] : memref<25x16x64xf32, #tpu.memory_space<vmem>>, vector<1x16x64xf32>
    %174 = vector.shape_cast %173 : vector<1x16x64xf32> to vector<16x64xf32>
    %175 = vector.extract_strided_slice %24 {offsets = [3, 0], sizes = [16, 64], strides = [1, 1]} : vector<20x64xf32> to vector<16x64xf32>
    %176 = vector.extract_strided_slice %29 {offsets = [3, 0], sizes = [16, 64], strides = [1, 1]} : vector<20x64xf32> to vector<16x64xf32>
    %177 = arith.mulf %175, %174 : vector<16x64xf32>
    %178 = arith.addf %170, %177 : vector<16x64xf32>
    %179 = arith.mulf %176, %174 : vector<16x64xf32>
    %180 = arith.addf %172, %179 : vector<16x64xf32>
    %c19 = arith.constant 19 : index
    %c0_71 = arith.constant 0 : index
    %c0_72 = arith.constant 0 : index
    %181 = vector.load %arg3[%c19, %c0_71, %c0_72] : memref<25x16x64xf32, #tpu.memory_space<vmem>>, vector<1x16x64xf32>
    %182 = vector.shape_cast %181 : vector<1x16x64xf32> to vector<16x64xf32>
    %183 = vector.extract_strided_slice %25 {offsets = [3, 0], sizes = [16, 64], strides = [1, 1]} : vector<20x64xf32> to vector<16x64xf32>
    %184 = vector.extract_strided_slice %30 {offsets = [3, 0], sizes = [16, 64], strides = [1, 1]} : vector<20x64xf32> to vector<16x64xf32>
    %185 = arith.mulf %183, %182 : vector<16x64xf32>
    %186 = arith.addf %178, %185 : vector<16x64xf32>
    %187 = arith.mulf %184, %182 : vector<16x64xf32>
    %188 = arith.addf %180, %187 : vector<16x64xf32>
    %c20 = arith.constant 20 : index
    %c0_73 = arith.constant 0 : index
    %c0_74 = arith.constant 0 : index
    %189 = vector.load %arg3[%c20, %c0_73, %c0_74] : memref<25x16x64xf32, #tpu.memory_space<vmem>>, vector<1x16x64xf32>
    %190 = vector.shape_cast %189 : vector<1x16x64xf32> to vector<16x64xf32>
    %191 = vector.extract_strided_slice %21 {offsets = [4, 0], sizes = [16, 64], strides = [1, 1]} : vector<20x64xf32> to vector<16x64xf32>
    %192 = vector.extract_strided_slice %26 {offsets = [4, 0], sizes = [16, 64], strides = [1, 1]} : vector<20x64xf32> to vector<16x64xf32>
    %193 = arith.mulf %191, %190 : vector<16x64xf32>
    %194 = arith.addf %186, %193 : vector<16x64xf32>
    %195 = arith.mulf %192, %190 : vector<16x64xf32>
    %196 = arith.addf %188, %195 : vector<16x64xf32>
    %c21 = arith.constant 21 : index
    %c0_75 = arith.constant 0 : index
    %c0_76 = arith.constant 0 : index
    %197 = vector.load %arg3[%c21, %c0_75, %c0_76] : memref<25x16x64xf32, #tpu.memory_space<vmem>>, vector<1x16x64xf32>
    %198 = vector.shape_cast %197 : vector<1x16x64xf32> to vector<16x64xf32>
    %199 = vector.extract_strided_slice %22 {offsets = [4, 0], sizes = [16, 64], strides = [1, 1]} : vector<20x64xf32> to vector<16x64xf32>
    %200 = vector.extract_strided_slice %27 {offsets = [4, 0], sizes = [16, 64], strides = [1, 1]} : vector<20x64xf32> to vector<16x64xf32>
    %201 = arith.mulf %199, %198 : vector<16x64xf32>
    %202 = arith.addf %194, %201 : vector<16x64xf32>
    %203 = arith.mulf %200, %198 : vector<16x64xf32>
    %204 = arith.addf %196, %203 : vector<16x64xf32>
    %c22 = arith.constant 22 : index
    %c0_77 = arith.constant 0 : index
    %c0_78 = arith.constant 0 : index
    %205 = vector.load %arg3[%c22, %c0_77, %c0_78] : memref<25x16x64xf32, #tpu.memory_space<vmem>>, vector<1x16x64xf32>
    %206 = vector.shape_cast %205 : vector<1x16x64xf32> to vector<16x64xf32>
    %207 = vector.extract_strided_slice %23 {offsets = [4, 0], sizes = [16, 64], strides = [1, 1]} : vector<20x64xf32> to vector<16x64xf32>
    %208 = vector.extract_strided_slice %28 {offsets = [4, 0], sizes = [16, 64], strides = [1, 1]} : vector<20x64xf32> to vector<16x64xf32>
    %209 = arith.mulf %207, %206 : vector<16x64xf32>
    %210 = arith.addf %202, %209 : vector<16x64xf32>
    %211 = arith.mulf %208, %206 : vector<16x64xf32>
    %212 = arith.addf %204, %211 : vector<16x64xf32>
    %c23 = arith.constant 23 : index
    %c0_79 = arith.constant 0 : index
    %c0_80 = arith.constant 0 : index
    %213 = vector.load %arg3[%c23, %c0_79, %c0_80] : memref<25x16x64xf32, #tpu.memory_space<vmem>>, vector<1x16x64xf32>
    %214 = vector.shape_cast %213 : vector<1x16x64xf32> to vector<16x64xf32>
    %215 = vector.extract_strided_slice %24 {offsets = [4, 0], sizes = [16, 64], strides = [1, 1]} : vector<20x64xf32> to vector<16x64xf32>
    %216 = vector.extract_strided_slice %29 {offsets = [4, 0], sizes = [16, 64], strides = [1, 1]} : vector<20x64xf32> to vector<16x64xf32>
    %217 = arith.mulf %215, %214 : vector<16x64xf32>
    %218 = arith.addf %210, %217 : vector<16x64xf32>
    %219 = arith.mulf %216, %214 : vector<16x64xf32>
    %220 = arith.addf %212, %219 : vector<16x64xf32>
    %c24 = arith.constant 24 : index
    %c0_81 = arith.constant 0 : index
    %c0_82 = arith.constant 0 : index
    %221 = vector.load %arg3[%c24, %c0_81, %c0_82] : memref<25x16x64xf32, #tpu.memory_space<vmem>>, vector<1x16x64xf32>
    %222 = vector.shape_cast %221 : vector<1x16x64xf32> to vector<16x64xf32>
    %223 = vector.extract_strided_slice %25 {offsets = [4, 0], sizes = [16, 64], strides = [1, 1]} : vector<20x64xf32> to vector<16x64xf32>
    %224 = vector.extract_strided_slice %30 {offsets = [4, 0], sizes = [16, 64], strides = [1, 1]} : vector<20x64xf32> to vector<16x64xf32>
    %225 = arith.mulf %223, %222 : vector<16x64xf32>
    %226 = arith.addf %218, %225 : vector<16x64xf32>
    %227 = arith.mulf %224, %222 : vector<16x64xf32>
    %228 = arith.addf %220, %227 : vector<16x64xf32>
    %cst_83 = arith.constant 9.99999974E-6 : f32
    %229 = vector.broadcast %cst_83 : f32 to vector<16x64xf32>
    %230 = arith.maximumf %228, %229 : vector<16x64xf32>
    %231 = tpu.reciprocal %230 {approx = true} : vector<16x64xf32> -> vector<16x64xf32>
    %232 = arith.mulf %226, %231 : vector<16x64xf32>
    %cst_84 = arith.constant 1.000000e-01 : f32
    %233 = vector.broadcast %cst_84 : f32 to vector<16x64xf32>
    %234 = arith.mulf %228, %233 : vector<16x64xf32>
    %c0_85 = arith.constant 0 : index
    %c0_86 = arith.constant 0 : index
    %235 = vector.load %arg7[%c0_85, %c0_86] : memref<16x64xf32, #tpu.memory_space<vmem>>, vector<16x64xf32>
    %236 = arith.addf %234, %235 : vector<16x64xf32>
    %c0_87 = arith.constant 0 : index
    %c0_88 = arith.constant 0 : index
    %237 = vector.load %arg6[%c0_87, %c0_88] : memref<16x64xf32, #tpu.memory_space<vmem>>, vector<16x64xf32>
    %238 = arith.mulf %236, %237 : vector<16x64xf32>
    %239 = arith.negf %238 : vector<16x64xf32>
    %240 = math.exp %239 : vector<16x64xf32>
    %cst_89 = arith.constant 1.000000e+00 : f32
    %241 = vector.broadcast %cst_89 : f32 to vector<16x64xf32>
    %242 = arith.addf %241, %240 : vector<16x64xf32>
    %243 = arith.divf %241, %242 : vector<16x64xf32>
    %244 = tpu.concatenate %232, %243 in 1 : vector<16x64xf32>, vector<16x64xf32> -> vector<16x128xf32>
    %245 = arith.truncf %244 : vector<16x128xf32> to vector<16x128xbf16>
    %c0_90 = arith.constant 0 : index
    %c0_91 = arith.constant 0 : index
    %246 = vector.load %arg4[%c0_90, %c0_91] : memref<128x128xbf16, #tpu.memory_space<vmem>>, vector<128x128xbf16>
    %cst_92 = arith.constant dense<0.000000e+00> : vector<16x128xf32>
    %247 = tpu.matmul %245, %246, %cst_92 {dimension_numbers = #tpu.dot_dimension_numbers<[1], [0], [0], [1], [0, 0, 1, 1], [], []>} : vector<16x128xbf16>, vector<128x128xbf16>, vector<16x128xf32> -> vector<16x128xf32>
    %c0_93 = arith.constant 0 : index
    %c0_94 = arith.constant 0 : index
    %248 = vector.load %arg5[%c0_93, %c0_94] : memref<16x128xf32, #tpu.memory_space<vmem>>, vector<16x128xf32>
    %249 = arith.addf %247, %248 : vector<16x128xf32>
    %c0_95 = arith.constant 0 : index
    %c0_96 = arith.constant 0 : index
    %c0_97 = arith.constant 0 : index
    %250 = vector.load %arg8[%c0_95, %c0_96, %c0_97] : memref<1x16x128xf32, #tpu.memory_space<vmem>>, vector<1x16x128xf32>
    %251 = vector.shape_cast %250 : vector<1x16x128xf32> to vector<16x128xf32>
    %252 = vector.shape_cast %249 : vector<16x128xf32> to vector<1x16x128xf32>
    tpu.vector_store %arg8[%c0_95, %c0_96, %c0_97], %252 {strides = array<i32>} : memref<1x16x128xf32, #tpu.memory_space<vmem>>, vector<1x16x128xf32>,
    return
  }
  func.func @transform_0(%arg0: i32) -> (i32, i32, i32) {
    %c0_i32 = arith.constant 0 : i32
    %c0_i32_0 = arith.constant 0 : i32
    %c0_i32_1 = arith.constant 0 : i32
    return %arg0, %c0_i32, %c0_i32_0 : i32, i32, i32
  }
  func.func @transform_1(%arg0: i32) -> (i32, i32, i32) {
    %c0_i32 = arith.constant 0 : i32
    %c0_i32_0 = arith.constant 0 : i32
    %c0_i32_1 = arith.constant 0 : i32
    return %arg0, %c0_i32, %c0_i32_0 : i32, i32, i32
  }
  func.func @transform_2(%arg0: i32) -> (i32, i32, i32) {
    %c0_i32 = arith.constant 0 : i32
    %c0_i32_0 = arith.constant 0 : i32
    %c0_i32_1 = arith.constant 0 : i32
    %c0_i32_2 = arith.constant 0 : i32
    return %c0_i32, %c0_i32_0, %c0_i32_1 : i32, i32, i32
  }
  func.func @transform_3(%arg0: i32) -> (i32, i32) {
    %c0_i32 = arith.constant 0 : i32
    %c0_i32_0 = arith.constant 0 : i32
    %c0_i32_1 = arith.constant 0 : i32
    return %c0_i32, %c0_i32_0 : i32, i32
  }
  func.func @transform_4(%arg0: i32) -> (i32, i32) {
    %c0_i32 = arith.constant 0 : i32
    %c0_i32_0 = arith.constant 0 : i32
    %c0_i32_1 = arith.constant 0 : i32
    return %c0_i32, %c0_i32_0 : i32, i32
  }
  func.func @transform_5(%arg0: i32) -> (i32, i32) {
    %c0_i32 = arith.constant 0 : i32
    %c0_i32_0 = arith.constant 0 : i32
    %c0_i32_1 = arith.constant 0 : i32
    return %c0_i32, %c0_i32_0 : i32, i32
  }
  func.func @transform_6(%arg0: i32) -> (i32, i32) {
    %c0_i32 = arith.constant 0 : i32
    %c0_i32_0 = arith.constant 0 : i32
    %c0_i32_1 = arith.constant 0 : i32
    return %c0_i32, %c0_i32_0 : i32, i32
  }
  func.func @transform_7(%arg0: i32) -> (i32, i32, i32) {
    %c0_i32 = arith.constant 0 : i32
    %c0_i32_0 = arith.constant 0 : i32
    %c0_i32_1 = arith.constant 0 : i32
    return %arg0, %c0_i32, %c0_i32_0 : i32, i32, i32
  }
}

</mosaic_0001>

<bundles_post_ra>
// kernel: _encoder_forward.1
= control target key start
LH: loop header
LB: loop body
LE: loop exit
PB: predicated region body
PF: predicated region fallthrough
CT: control target
= control target key end

     0   :  { %s1967_s24 = smov 0   ;;  %s3008_s0 = inlined_call_operand.vmem [shape: f32[2,16,64], index: 0, kind: input, shape index: {}]   ;;  %s3009_s1 = inlined_call_operand.vmem [shape: f32[2,16,64], index: 1, kind: input, shape index: {}]   ;;  %s3010_s2 = inlined_call_operand.vmem [shape: f32[25,16,64], index: 2, kind: input, shape index: {}]   ;;  %s3011_s3 = inlined_call_operand.vmem [shape: bf16[128,128], index: 3, kind: input, shape index: {}]   ;;  %s3012_s4 = inlined_call_operand.vmem [shape: f32[16,128], index: 4, kind: input, shape index: {}]   ;;  %s3013_s5 = inlined_call_operand.vmem [shape: f32[16,64], index: 5, kind: input, shape index: {}]   ;;  %s3014_s6 = inlined_call_operand.vmem [shape: f32[16,64], index: 6, kind: input, shape index: {}]   ;;  %s3015_s7 = inlined_call_operand.vmem [shape: f32[2,16,128], index: 7, kind: output, shape index: {}]  }
   0x1 LB: > { %s1761_s25 = sadd.s32 4294967295, %s1914_s24   ;;  %p1765_p0 = scmp.ge.s32.totalorder %s1914_s24, 1  ;;  %s1914_s24 = sphi %s1967_s24, %s17_s24  }
   0x2   : > { %p247_p1 = scmp.lt.s32.totalorder %s1914_s24, 3 }
   0x4   : > { %p248_p2 = pnand %p1765_p0, %p247_p1 }
   0x6   : > { %251 = sbr.rel (%p248_p2) target bundleno = 740 (0x2e4), region = 48 }
   0xd   : > { %v1772_v0 = vld [vmem:[%s3010_s2 + $0x10] sm:$0xff]  ;;  %p284_p3 = scmp.lt.s32.totalorder %s1761_s25, 1  ;;  %s1916_s28 = smov 4   ;;  %v1773_v1 = vld [vmem:[%s3010_s2 + $0x18] sm:$0xff]  ;;  %v1775_v3 = vld [vmem:[%s3010_s2 + $0x28] sm:$0xff]  ;;  %vm306_vm0 = vcmask 648192  }
   0xe   : > { %359 = vrot.lane.b32.xlu1 %v1772_v0, %s1916_s28  ;;  %s1917_s14 = smov 8   ;;  %v3016_v5 = vmov 0.0   ;;  %v1777_v6 = vld [vmem:[%s3010_s2 + $0x38] sm:$0xff]  ;;  %vm309_vm1 = vcmask 64512   ;;  %v1782_v7 = vld [vmem:[%s3010_s2 + $0x60] sm:$0xff]  ;;  %v1783_v8 = vld [vmem:[%s3010_s2 + $0x68] sm:$0xff] }
   0xf   : > { %s3107_s25 = smov (!%p284_p3, %s1761_s25), 1  ;;  %315 = vst.msk [vmem:[#allocation3] sm:$0x3] %vm306_vm0, %v3016_v5  ;;  %307 = vst.msk [vmem:[#allocation2] sm:$0x3] %vm306_vm0, %v3016_v5  ;;  %1844 = vmatprep.subr.bf16.mxu0 %v3016_v5  ;;  %v1774_v9 = vld [vmem:[%s3010_s2 + $0x20] sm:$0xff] }
  0x10   : > { %s1982_s8 = sshll.u32 %s3107_s25, 4  ;;  %308 = vst.msk [vmem:[#allocation2 + $0x12] sm:$0x3] %vm306_vm0, %v3016_v5  ;;  %316 = vst.msk [vmem:[#allocation3 + $0x12] sm:$0x3] %vm306_vm0, %v3016_v5  ;;  %s1919_s23 = smov 12  }
  0x11   : > { %s293_s11 = scalar_lea.vmem %s3009_s1, %s1982_s8  ;;  %317 = vst.msk [vmem:[#allocation3 + $0x2] sm:$0xff] %vm309_vm1, %v3016_v5  ;;  %310 = vst.msk [vmem:[#allocation2 + $0x2] sm:$0xff] %vm309_vm1, %v3016_v5  ;;  %v1779_v10 = vld [vmem:[%s3010_s2 + $0x48] sm:$0xff]  ;;  %v542_v11 = vrot.slane %v1782_v7, 7  ;;  %v543_v12 = vrot.slane %v1783_v8, 7  ;;  %vm499_vm2 = vcmask 1040384   ;;  %s288_s26 = scalar_lea.vmem %s3008_s0, %s1982_s8 }
  0x12   : > { %361 = vrot.lane.b32.xlu1 %v1773_v1, %s1916_s28  ;;  %v1989_v2 = vld [vmem:[%s293_s11] sm:$0xff]  ;;  %v1996_v4 = vld [vmem:[%s293_s11 + $0x8] sm:$0xff]  ;;  %311 = vst.msk [vmem:[#allocation2 + $0xa] sm:$0xff] %vm309_vm1, %v3016_v5  ;;  %318 = vst.msk [vmem:[#allocation3 + $0xa] sm:$0xff] %vm309_vm1, %v3016_v5  ;;  %vm312_vm3 = vcmask 654912   ;;  %s1920_s30 = smov 16   ;;  %s298_s18 = scalar_lea.vmem %s3015_s7, %s1982_s8 }
  0x13   : > { %334 = vrot.lane.b32.xlu0 %v1989_v2, %s1917_s14  ;;  %v1776_v13 = vld [vmem:[%s3010_s2 + $0x30] sm:$0xff]  ;;  %319 = vst.msk [vmem:[#allocation3 + $0x2] sm:$0xff] %vm312_vm3, %v3016_v5  ;;  %313 = vst.msk [vmem:[#allocation2 + $0x2] sm:$0xff] %vm312_vm3, %v3016_v5  ;;  %v544_v15 = vsel %vm499_vm2, %v542_v11, %v543_v12  ;;  %v1778_v16 = vld [vmem:[%s3010_s2 + $0x40] sm:$0xff]  ;;  %vm762_vm4 = vcmask 1041408   ;;  %vm1025_vm5 = vcmask 1042432  }
  0x14   : > { %v1784_v14 = vld [vmem:[%s3010_s2 + $0x70] sm:$0xff]  ;;  %314 = vst.msk [vmem:[#allocation2 + $0xa] sm:$0xff] %vm312_vm3, %v3016_v5  ;;  %320 = vst.msk [vmem:[#allocation3 + $0xa] sm:$0xff] %vm312_vm3, %v3016_v5  ;;  %v1785_v18 = vld [vmem:[%s3010_s2 + $0x78] sm:$0xff]  ;;  %vm1288_vm6 = vcmask 1043456   ;;  %vm329_vm7 = vcmask 588864  }
  0x15   : > { %v597_v17 = vrot.slane %v1784_v14, 7  ;;  %v1786_v19 = vld [vmem:[%s3010_s2 + $0x80] sm:$0xff]  ;;  %v1787_v20 = vld [vmem:[%s3010_s2 + $0x88] sm:$0xff]  ;;  %v598_v21 = vrot.slane %v1785_v18, 7  ;;  %v1788_v25 = vld [vmem:[%s3010_s2 + $0x90] sm:$0xff]  ;;  %s1924_s21 = smov 112  }
  0x16   : > { %396 = vrot.lane.b32.xlu1 %v1775_v3, %s1917_s14  ;;  %v652_v22 = vrot.slane %v1786_v19, 7  ;;  %v653_v23 = vrot.slane %v1787_v20, 7  ;;  %v707_v27 = vrot.slane %v1788_v25, 7  ;;  %v1789_v28 = vld [vmem:[%s3010_s2 + $0x98] sm:$0xff]  ;;  %v1792_v29 = vld [vmem:[%s3010_s2 + $0xb0] sm:$0xff]  ;;  %v1794_v35 = vld [vmem:[%s3010_s2 + $0xc0] sm:$0xff] }
  0x17   : > { %336 = vrot.lane.b32.xlu0 %v1996_v4, %s1917_s14  ;;  %v599_v26 = vsel %vm499_vm2, %v597_v17, %v598_v21  ;;  %v1793_v30 = vld [vmem:[%s3010_s2 + $0xb8] sm:$0xff]  ;;  %v708_v31 = vrot.slane %v1789_v28, 7  ;;  %v805_v32 = vrot.slane %v1792_v29, 6  ;;  %v860_v37 = vrot.slane %v1794_v35, 6  ;;  %v1795_v38 = vld [vmem:[%s3010_s2 + $0xc8] sm:$0xff]  ;;  %v1796_v39 = vld [vmem:[%s3010_s2 + $0xd0] sm:$0xff] }
  0x18   : > { %v654_v24 = vsel %vm499_vm2, %v652_v22, %v653_v23  ;;  %v806_v33 = vrot.slane %v1793_v30, 6  ;;  %v1797_v40 = vld [vmem:[%s3010_s2 + $0xd8] sm:$0xff]  ;;  %v861_v41 = vrot.slane %v1795_v38, 6  ;;  %v915_v42 = vrot.slane %v1796_v39, 6  ;;  %v1798_v45 = vld [vmem:[%s3010_s2 + $0xe0] sm:$0xff]  ;;  %v1799_v48 = vld [vmem:[%s3010_s2 + $0xe8] sm:$0xff] }
  0x19   : > { %v709_v36 = vsel %vm499_vm2, %v707_v27, %v708_v31  ;;  %v916_v43 = vrot.slane %v1797_v40, 6  ;;  %v970_v47 = vrot.slane %v1798_v45, 6  ;;  %v1802_v49 = vld [vmem:[%s3010_s2 + $0x100] sm:$0xff]  ;;  %v1803_v50 = vld [vmem:[%s3010_s2 + $0x108] sm:$0xff]  ;;  %v971_v51 = vrot.slane %v1799_v48, 6  ;;  %v1804_v55 = vld [vmem:[%s3010_s2 + $0x110] sm:$0xff] }
  0x1a   : > { %431 = vrot.lane.b32.xlu1 %v1777_v6, %s1919_s23  ;;  %v807_v34 = vsel %vm762_vm4, %v805_v32, %v806_v33  ;;  %v862_v46 = vsel %vm762_vm4, %v860_v37, %v861_v41  ;;  %v1068_v52 = vrot.slane %v1802_v49, 5  ;;  %v1069_v53 = vrot.slane %v1803_v50, 5  ;;  %v1805_v58 = vld [vmem:[%s3010_s2 + $0x118] sm:$0xff]  ;;  %v1806_v59 = vld [vmem:[%s3010_s2 + $0x120] sm:$0xff]  ;;  %v1807_v60 = vld [vmem:[%s3010_s2 + $0x128] sm:$0xff] }
  0x1b   : > { %394 = vrot.lane.b32.xlu0 %v1774_v9, %s1917_s14  ;;  %v917_v44 = vsel %vm762_vm4, %v915_v42, %v916_v43  ;;  %v972_v56 = vsel %vm762_vm4, %v970_v47, %v971_v51  ;;  %v1123_v57 = vrot.slane %v1804_v55, 5  ;;  %v1124_v61 = vrot.slane %v1805_v58, 5  ;;  %v1808_v1 = vld [vmem:[%s3010_s2 + $0x130] sm:$0xff]  ;;  %v1809_v7 = vld [vmem:[%s3010_s2 + $0x138] sm:$0xff]  ;;  %v1814_v14 = vld [vmem:[%s3010_s2 + $0x160] sm:$0xff] }
  0x1c   : > { %v1070_v54 = vsel %vm1025_vm5, %v1068_v52, %v1069_v53  ;;  %v1178_v62 = vrot.slane %v1806_v59, 5  ;;  %v1179_v63 = vrot.slane %v1807_v60, 5  ;;  %v1233_v6 = vrot.slane %v1808_v1, 5  ;;  %v1812_v8 = vld [vmem:[%s3010_s2 + $0x150] sm:$0xff]  ;;  %v1813_v9 = vld [vmem:[%s3010_s2 + $0x158] sm:$0xff] }
  0x1d   : > { %v1125_v3 = vsel %vm1025_vm5, %v1123_v57, %v1124_v61  ;;  %v1816_v18 = vld [vmem:[%s3010_s2 + $0x170] sm:$0xff]  ;;  %v1817_v19 = vld [vmem:[%s3010_s2 + $0x178] sm:$0xff]  ;;  %vm512_vm8 = vcmask 1046528   ;;  %vm775_vm9 = vcmask 1045504   ;;  %vm1038_vm10 = vcmask 1044480  }
  0x1e   : > { %466 = vrot.lane.b32.xlu1 %v1779_v10, %s1920_s30  ;;  %v1180_v0 = vsel %vm1025_vm5, %v1178_v62, %v1179_v63  ;;  %v1234_v10 = vrot.slane %v1809_v7, 5  ;;  %vm1925_vm11 = vmmov 0   ;;  %vm1581_vm12 = vcmask 523264  }
  0x1f   : > { %429 = vrot.lane.b32.xlu0 %v1776_v13, %s1919_s23 }
  0x22   : > { %547 = vrot.lane.b32.xlu1 %v544_v15, %s1916_s28  ;;  %v1235_v15 = vsel %vm1025_vm5, %v1233_v6, %v1234_v10 }
  0x23   : > { %464 = vrot.lane.b32.xlu0 %v1778_v16, %s1920_s30  ;;  %v1385_v16 = vrot.slane %v1814_v14, 4 }
  0x26   : > { %600 = vrot.lane.b32.xlu1 %v597_v17, %s1917_s14  ;;  %v1815_v17 = vld [vmem:[%s3010_s2 + $0x168] sm:$0xff] }
  0x27   : > { %545 = vrot.lane.b32.xlu0 %v542_v11, %s1916_s28  ;;  %v1330_v11 = vrot.slane %v1812_v8, 4  ;;  %v1386_v20 = vrot.slane %v1815_v17, 4 }
  0x29   : > { %v1387_v25 = vsel %vm1288_vm6, %v1385_v16, %v1386_v20 }
  0x2a   : > { %604 = vrot.lane.b32.xlu1 %v598_v21, %s1917_s14  ;;  %v1440_v21 = vrot.slane %v1816_v18, 4 }
  0x2b   : > { %549 = vrot.lane.b32.xlu0 %v543_v12, %s1916_s28  ;;  %v1331_v12 = vrot.slane %v1813_v9, 4 }
  0x2d   : > { %v1332_v13 = vsel %vm1288_vm6, %v1330_v11, %v1331_v12 }
  0x2e   : > { %657 = vrot.lane.b32.xlu1 %v654_v24, %s1919_s23  ;;  %v1818_v24 = vld [vmem:[%s3010_s2 + $0x180] sm:$0xff] }
  0x2f   : > { %602 = vrot.lane.b32.xlu0 %v599_v26, %s1917_s14  ;;  %v1495_v26 = vrot.slane %v1818_v24, 4 }
  0x32   : > { %710 = vrot.lane.b32.xlu1 %v707_v27, %s1920_s30  ;;  %v1819_v27 = vld [vmem:[%s3010_s2 + $0x188] sm:$0xff] }
  0x33   : > { %655 = vrot.lane.b32.xlu0 %v652_v22, %s1919_s23  ;;  %v1441_v22 = vrot.slane %v1817_v19, 4  ;;  %v1496_v28 = vrot.slane %v1819_v27, 4 }
  0x35   : > { %v1497_v30 = vsel %vm1288_vm6, %v1495_v26, %v1496_v28 }
  0x36   : > { %714 = vrot.lane.b32.xlu1 %v708_v31, %s1920_s30 }
  0x37   : > { %659 = vrot.lane.b32.xlu0 %v653_v23, %s1919_s23  ;;  %v1442_v23 = vsel %vm1288_vm6, %v1440_v21, %v1441_v22 }
  0x3a   : > { %810 = vrot.lane.b32.xlu1 %v807_v34, %s1916_s28 }
  0x3b   : > { %712 = vrot.lane.b32.xlu0 %v709_v36, %s1920_s30 }
  0x3e   : > { %863 = vrot.lane.b32.xlu1 %v860_v37, %s1917_s14 }
  0x3f   : > { %808 = vrot.lane.b32.xlu0 %v805_v32, %s1916_s28 }
  0x42   : > { %867 = vrot.lane.b32.xlu1 %v861_v41, %s1917_s14 }
  0x43   : > { %812 = vrot.lane.b32.xlu0 %v806_v33, %s1916_s28 }
  0x46   : > { %920 = vrot.lane.b32.xlu1 %v917_v44, %s1919_s23 }
  0x47   : > { %865 = vrot.lane.b32.xlu0 %v862_v46, %s1917_s14 }
  0x4a   : > { %973 = vrot.lane.b32.xlu1 %v970_v47, %s1920_s30 }
  0x4b   : > { %918 = vrot.lane.b32.xlu0 %v915_v42, %s1919_s23 }
  0x4e   : > { %977 = vrot.lane.b32.xlu1 %v971_v51, %s1920_s30 }
  0x4f   : > { %922 = vrot.lane.b32.xlu0 %v916_v43, %s1919_s23 }
  0x52   : > { %1073 = vrot.lane.b32.xlu1 %v1070_v54, %s1916_s28 }
  0x53   : > { %975 = vrot.lane.b32.xlu0 %v972_v56, %s1920_s30 }
  0x56   : > { %1126 = vrot.lane.b32.xlu1 %v1123_v57, %s1917_s14 }
  0x57   : > { %1071 = vrot.lane.b32.xlu0 %v1068_v52, %s1916_s28 }
  0x5a   : > { %1130 = vrot.lane.b32.xlu1 %v1124_v61, %s1917_s14 }
  0x5b   : > { %1075 = vrot.lane.b32.xlu0 %v1069_v53, %s1916_s28 }
  0x5e   : > { %1183 = vrot.lane.b32.xlu1 %v1180_v0, %s1919_s23 }
  0x5f   : > { %1128 = vrot.lane.b32.xlu0 %v1125_v3, %s1917_s14 }
  0x62   : > { %1236 = vrot.lane.b32.xlu1 %v1233_v6, %s1920_s30 }
  0x63   : > { %1181 = vrot.lane.b32.xlu0 %v1178_v62, %s1919_s23 }
  0x66   : > { %1240 = vrot.lane.b32.xlu1 %v1234_v10, %s1920_s30 }
  0x67   : > { %1185 = vrot.lane.b32.xlu0 %v1179_v63, %s1919_s23 }
  0x6a   : > { %1335 = vrot.lane.b32.xlu1 %v1332_v13, %s1916_s28 }
  0x6b   : > { %1238 = vrot.lane.b32.xlu0 %v1235_v15, %s1920_s30 }
  0x6e   : > { %1388 = vrot.lane.b32.xlu1 %v1385_v16, %s1917_s14 }
  0x6f   : > { %1333 = vrot.lane.b32.xlu0 %v1330_v11, %s1916_s28 }
  0x72   : > { %1392 = vrot.lane.b32.xlu1 %v1386_v20, %s1917_s14 }
  0x73   : > { %1337 = vrot.lane.b32.xlu0 %v1331_v12, %s1916_s28  ;;  %s1921_s28 = smov 124  }
  0x76   : > { %1445 = vrot.lane.b32.xlu1 %v1442_v23, %s1919_s23 }
  0x77   : > { %1390 = vrot.lane.b32.xlu0 %v1387_v25, %s1917_s14 }
  0x7a   : > { %1498 = vrot.lane.b32.xlu1 %v1495_v26, %s1920_s30 }
  0x7b   : > { %1443 = vrot.lane.b32.xlu0 %v1440_v21, %s1919_s23 }
  0x7e   : > { %1502 = vrot.lane.b32.xlu1 %v1496_v28, %s1920_s30 }
  0x7f   : > { %1447 = vrot.lane.b32.xlu0 %v1441_v22, %s1919_s23  ;;  %s1922_s23 = smov 120  }
  0x80   : > { %v2191_v29 = vpop.permute.xlu1 %359 }
  0x83   : > { %1500 = vrot.lane.b32.xlu0 %v1497_v30, %s1920_s30  ;;  %s1923_s30 = smov 116  }
  0x84   : > { %v2195_v31 = vpop.permute.xlu1 %361 }
  0x85   : > { %v335_v32 = vpop.permute.xlu0 %334 }
  0x86   : > { %340 = vst.msk [vmem:[#allocation3 + $0x2] sm:$0xff] %vm329_vm7, %v335_v32 }
  0x88   : > { %v2199_v33 = vpop.permute.xlu1 %396 }
  0x89   : > { %v337_v34 = vpop.permute.xlu0 %336 }
  0x8a   : > { %341 = vst.msk [vmem:[#allocation3 + $0xa] sm:$0xff] %vm329_vm7, %v337_v34  ;;  %v300_v34 = vld [vmem:[%s288_s26] sm:$0xff] }
  0x8c   : > { %v2202_v35 = vpop.permute.xlu1 %431 }
  0x8d   : > { %v2204_v36 = vld [vmem:[#allocation3] sm:$0xff]  ;;  %v2206_v37 = vpop.permute.xlu0 %394 }
  0x8e   : > { %v377_v38 = vmul.f32 %v2191_v29, %v2204_v36  ;;  %v412_v42 = vmul.f32 %v2206_v37, %v2204_v36 }
  0x90   : > { %v2210_v39 = vpop.permute.xlu1 %466  ;;  %381 = vrot.lane.b32.xlu0 %v377_v38, %s1921_s28  ;;  %v301_v38 = vld [vmem:[%s288_s26 + $0x8] sm:$0xff] }
  0x91   : > { %v2213_v40 = vld [vmem:[#allocation3 + $0x8] sm:$0xff]  ;;  %v2215_v41 = vpop.permute.xlu0 %429  ;;  %v2249_v57 = vld [vmem:[#allocation3 + $0x10] sm:$0xf] }
  0x92   : > { %v378_v43 = vmul.f32 %v2195_v31, %v2213_v40  ;;  %v447_v46 = vmul.f32 %v2215_v41, %v2204_v36  ;;  %v413_v47 = vmul.f32 %v2199_v33, %v2213_v40  ;;  %v448_v51 = vmul.f32 %v2202_v35, %v2213_v40 }
  0x93   : > { %v483_v59 = vmul.f32 %v2210_v39, %v2213_v40 }
  0x94   : > { %v2221_v44 = vpop.permute.xlu1 %547  ;;  %383 = vrot.lane.b32.xlu1 %v378_v43, %s1921_s28  ;;  %416 = vrot.lane.b32.xlu0 %v412_v42, %s1922_s23 }
  0x95   : > { %v2225_v45 = vpop.permute.xlu0 %464  ;;  %v574_v49 = vmul.f32 %v2221_v44, %v2213_v40 }
  0x96   : > { %v482_v52 = vmul.f32 %v2225_v45, %v2204_v36 }
  0x97   : > { %v580_v55 = vrot.slane %v574_v49, 1 }
  0x98   : > { %v2231_v48 = vpop.permute.xlu1 %600  ;;  %418 = vrot.lane.b32.xlu1 %v413_v47, %s1922_s23  ;;  %451 = vrot.lane.b32.xlu0 %v447_v46, %s1923_s30 }
  0x99   : > { %v2237_v50 = vpop.permute.xlu0 %545  ;;  %v628_v63 = vmul.f32 %v2231_v48, %v2204_v36 }
  0x9a   : > { %v573_v53 = vmul.f32 %v2237_v50, %v2204_v36 }
  0x9b   : > { %v634_v9 = vrot.slane %v628_v63, 1 }
  0x9c   : > { %v2245_v54 = vpop.permute.xlu1 %604  ;;  %v579_v56 = vrot.slane %v573_v53, 1  ;;  %453 = vrot.lane.b32.xlu1 %v448_v51, %s1923_s30  ;;  %486 = vrot.lane.b32.xlu0 %v482_v52, %s1924_s21  ;;  %v304_v53 = vmul.f32 %v1989_v2, %v300_v34 }
  0x9d   : > { %v2251_v58 = vpop.permute.xlu0 %549  ;;  %v630_v0 = vmul.f32 %v2245_v54, %v2249_v57 }
  0x9e   : > { %v575_v60 = vmul.f32 %v2251_v58, %v2249_v57  ;;  %v581_v61 = vsel %vm512_vm8, %v579_v56, %v580_v55 }
  0x9f   : > { %v637_v10 = vrot.slane %v630_v0, 1 }
  0xa0   : > { %v2258_v62 = vpop.permute.xlu1 %657  ;;  %v582_v1 = vrot.slane %v575_v60, 1  ;;  %488 = vrot.lane.b32.xlu1 %v483_v59, %s1924_s21  ;;  %584 = vrot.lane.b32.xlu0 %v581_v61, %s1921_s28 }
  0xa1   : > { %v2266_v3 = vpop.permute.xlu0 %602  ;;  %v684_v11 = vmul.f32 %v2258_v62, %v2213_v40 }
  0xa2   : > { %v629_v6 = vmul.f32 %v2266_v3, %v2213_v40  ;;  %v583_v7 = vsel %vm512_vm8, %v580_v55, %v582_v1  ;;  %v305_v55 = vmul.f32 %v1996_v4, %v301_v38 }
  0xa3   : > { %v690_v18 = vrot.slane %v684_v11, 1 }
  0xa4   : > { %v2271_v8 = vpop.permute.xlu1 %710  ;;  %v635_v12 = vrot.slane %v629_v6, 1  ;;  %586 = vrot.lane.b32.xlu1 %v583_v7, %s1921_s28 }
  0xa5   : > { %v2276_v13 = vpop.permute.xlu0 %655  ;;  %v738_v24 = vmul.f32 %v2271_v8, %v2204_v36 }
  0xa6   : > { %v683_v14 = vmul.f32 %v2276_v13, %v2204_v36  ;;  %v636_v15 = vsel %vm512_vm8, %v634_v9, %v635_v12  ;;  %v638_v16 = vsel %vm512_vm8, %v635_v12, %v637_v10 }
  0xa7   : > { %639 = vrot.lane.b32.xlu0 %v636_v15, %s1922_s23  ;;  %v744_v42 = vrot.slane %v738_v24, 1 }
  0xa8   : > { %v2282_v17 = vpop.permute.xlu1 %714  ;;  %v689_v19 = vrot.slane %v683_v14, 1  ;;  %641 = vrot.lane.b32.xlu1 %v638_v16, %s1922_s23 }
  0xa9   : > { %v2286_v20 = vpop.permute.xlu0 %659  ;;  %v740_v25 = vmul.f32 %v2282_v17, %v2249_v57 }
  0xaa   : > { %v685_v21 = vmul.f32 %v2286_v20, %v2249_v57  ;;  %v691_v22 = vsel %vm512_vm8, %v689_v19, %v690_v18 }
  0xab   : > { %694 = vrot.lane.b32.xlu0 %v691_v22, %s1923_s30  ;;  %v747_v43 = vrot.slane %v740_v25, 1 }
  0xac   : > { %v2291_v23 = vpop.permute.xlu1 %810  ;;  %v692_v26 = vrot.slane %v685_v21, 1 }
  0xad   : > { %v2302_v27 = vpop.permute.xlu0 %712  ;;  %v837_v59 = vmul.f32 %v2291_v23, %v2213_v40 }
  0xae   : > { %v739_v28 = vmul.f32 %v2302_v27, %v2213_v40  ;;  %v693_v30 = vsel %vm512_vm8, %v690_v18, %v692_v26 }
  0xaf   : > { %696 = vrot.lane.b32.xlu1 %v693_v30, %s1923_s30  ;;  %v843_v2 = vrot.slane %v837_v59, 2 }
  0xb0   : > { %v2307_v32 = vpop.permute.xlu1 %863  ;;  %v745_v46 = vrot.slane %v739_v28, 1 }
  0xb1   : > { %v2310_v47 = vpop.permute.xlu0 %808  ;;  %v891_v4 = vmul.f32 %v2307_v32, %v2204_v36 }
  0xb2   : > { %v836_v49 = vmul.f32 %v2310_v47, %v2204_v36  ;;  %v748_v51 = vsel %vm512_vm8, %v745_v46, %v747_v43  ;;  %v746_v52 = vsel %vm512_vm8, %v744_v42, %v745_v46 }
  0xb3   : > { %751 = vrot.lane.b32.xlu1 %v748_v51, %s1924_s21  ;;  %749 = vrot.lane.b32.xlu0 %v746_v52, %s1924_s21  ;;  %v897_v14 = vrot.slane %v891_v4, 2 }
  0xb4   : > { %v2318_v56 = vpop.permute.xlu1 %867  ;;  %v842_v61 = vrot.slane %v836_v49, 2 }
  0xb5   : > { %v2324_v60 = vpop.permute.xlu0 %812  ;;  %v893_v1 = vmul.f32 %v2318_v56, %v2249_v57 }
  0xb6   : > { %v838_v63 = vmul.f32 %v2324_v60, %v2249_v57  ;;  %v844_v11 = vsel %vm775_vm9, %v842_v61, %v843_v2 }
  0xb7   : > { %325 = vrot.lane.b32.xlu1 %v305_v55, %s1917_s14  ;;  %323 = vrot.lane.b32.xlu0 %v304_v53, %s1917_s14  ;;  %v900_v15 = vrot.slane %v893_v1, 2 }
  0xb8   : > { %v2328_v0 = vpop.permute.xlu1 %920  ;;  %v845_v6 = vrot.slane %v838_v63, 2 }
  0xb9   : > { %v2336_v7 = vpop.permute.xlu0 %865  ;;  %v947_v16 = vmul.f32 %v2328_v0, %v2213_v40 }
  0xba   : > { %v892_v9 = vmul.f32 %v2336_v7, %v2213_v40  ;;  %v846_v10 = vsel %vm775_vm9, %v843_v2, %v845_v6 }
  0xbb   : > { %849 = vrot.lane.b32.xlu1 %v846_v10, %s1921_s28  ;;  %847 = vrot.lane.b32.xlu0 %v844_v11, %s1921_s28  ;;  %v953_v26 = vrot.slane %v947_v16, 2 }
  0xbc   : > { %v2342_v12 = vpop.permute.xlu1 %973  ;;  %v898_v18 = vrot.slane %v892_v9, 2 }
  0xbd   : > { %3047 = vst [vmem:[#allocation4_spill] sm:$0xff] %v2342_v12  ;;  %v2348_v19 = vpop.permute.xlu0 %918  ;;  %v1001_v43 = vmul.f32 %v2342_v12, %v2204_v36 }
  0xbe   : > { %v946_v21 = vmul.f32 %v2348_v19, %v2204_v36  ;;  %v901_v22 = vsel %vm775_vm9, %v898_v18, %v900_v15  ;;  %v899_v24 = vsel %vm775_vm9, %v897_v14, %v898_v18 }
  0xbf   : > { %904 = vrot.lane.b32.xlu1 %v901_v22, %s1922_s23  ;;  %902 = vrot.lane.b32.xlu0 %v899_v24, %s1922_s23  ;;  %v1007_v59 = vrot.slane %v1001_v43, 2 }
  0xc0   : > { %v2354_v25 = vpop.permute.xlu1 %977  ;;  %v952_v28 = vrot.slane %v946_v21, 2 }
  0xc1   : > { %3048 = vst [vmem:[#allocation5_spill] sm:$0xff] %v2354_v25  ;;  %v2358_v30 = vpop.permute.xlu0 %922  ;;  %v1003_v46 = vmul.f32 %v2354_v25, %v2249_v57 }
  0xc2   : > { %v948_v34 = vmul.f32 %v2358_v30, %v2249_v57  ;;  %v954_v38 = vsel %vm775_vm9, %v952_v28, %v953_v26 }
  0xc3   : > { %957 = vrot.lane.b32.xlu0 %v954_v38, %s1923_s30  ;;  %v1010_v61 = vrot.slane %v1003_v46, 2 }
  0xc4   : > { %v2363_v42 = vpop.permute.xlu1 %1073  ;;  %v955_v49 = vrot.slane %v948_v34, 2 }
  0xc5   : > { %3049 = vst [vmem:[#allocation6_spill] sm:$0xff] %v2363_v42  ;;  %v2370_v51 = vpop.permute.xlu0 %975  ;;  %v1100_v63 = vmul.f32 %v2363_v42, %v2213_v40 }
  0xc6   : > { %3050 = vst [vmem:[#allocation7_spill] sm:$0xff] %v2370_v51  ;;  %v1002_v52 = vmul.f32 %v2370_v51, %v2213_v40  ;;  %v956_v53 = vsel %vm775_vm9, %v953_v26, %v955_v49 }
  0xc7   : > { %959 = vrot.lane.b32.xlu1 %v956_v53, %s1923_s30  ;;  %v1106_v11 = vrot.slane %v1100_v63, 3 }
  0xc8   : > { %v2375_v55 = vpop.permute.xlu1 %1126  ;;  %v1008_v2 = vrot.slane %v1002_v52, 2 }
  0xc9   : > { %3051 = vst [vmem:[#allocation8_spill] sm:$0xff] %v2375_v55  ;;  %v2380_v4 = vpop.permute.xlu0 %1071  ;;  %v1154_v22 = vmul.f32 %v2375_v55, %v2204_v36 }
  0xca   : > { %3052 = vst [vmem:[#allocation9_spill] sm:$0xff] %v2380_v4  ;;  %v1099_v1 = vmul.f32 %v2380_v4, %v2204_v36  ;;  %v1011_v6 = vsel %vm775_vm9, %v1008_v2, %v1010_v61  ;;  %v1009_v9 = vsel %vm775_vm9, %v1007_v59, %v1008_v2 }
  0xcb   : > { %1014 = vrot.lane.b32.xlu1 %v1011_v6, %s1924_s21  ;;  %1012 = vrot.lane.b32.xlu0 %v1009_v9, %s1924_s21  ;;  %v1160_v46 = vrot.slane %v1154_v22, 3 }
  0xcc   : > { %v2386_v10 = vpop.permute.xlu1 %1130  ;;  %v1105_v14 = vrot.slane %v1099_v1, 3 }
  0xcd   : > { %3053 = vst [vmem:[#allocation10_spill] sm:$0xff] %v2386_v10  ;;  %v2390_v15 = vpop.permute.xlu0 %1075  ;;  %v1156_v24 = vmul.f32 %v2386_v10, %v2249_v57 }
  0xce   : > { %3054 = vst [vmem:[#allocation11_spill] sm:$0xff] %v2390_v15  ;;  %v1101_v16 = vmul.f32 %v2390_v15, %v2249_v57  ;;  %v1107_v18 = vsel %vm1038_vm10, %v1105_v14, %v1106_v11 }
  0xcf   : > { %1110 = vrot.lane.b32.xlu0 %v1107_v18, %s1921_s28  ;;  %v1163_v49 = vrot.slane %v1156_v24, 3 }
  0xd0   : > { %v2395_v21 = vpop.permute.xlu1 %1183  ;;  %v1108_v26 = vrot.slane %v1101_v16, 3 }
  0xd1   : > { %3055 = vst [vmem:[#allocation12_spill] sm:$0xff] %v2395_v21  ;;  %v2402_v28 = vpop.permute.xlu0 %1128  ;;  %v1210_v52 = vmul.f32 %v2395_v21, %v2213_v40 }
  0xd2   : > { %3056 = vst [vmem:[#allocation13_spill] sm:$0xff] %v2402_v28  ;;  %v1155_v34 = vmul.f32 %v2402_v28, %v2213_v40  ;;  %v1109_v38 = vsel %vm1038_vm10, %v1106_v11, %v1108_v26 }
  0xd3   : > { %1112 = vrot.lane.b32.xlu1 %v1109_v38, %s1921_s28  ;;  %v1216_v6 = vrot.slane %v1210_v52, 3 }
  0xd4   : > { %v2407_v43 = vpop.permute.xlu1 %1236  ;;  %v1161_v53 = vrot.slane %v1155_v34, 3 }
  0xd5   : > { %3057 = vst [vmem:[#allocation14_spill] sm:$0xff] %v2407_v43  ;;  %v2412_v59 = vpop.permute.xlu0 %1181  ;;  %v1264_v22 = vmul.f32 %v2407_v43, %v2204_v36 }
  0xd6   : > { %3058 = vst [vmem:[#allocation15_spill] sm:$0xff] %v2412_v59  ;;  %v1209_v61 = vmul.f32 %v2412_v59, %v2204_v36  ;;  %v1164_v63 = vsel %vm1038_vm10, %v1161_v53, %v1163_v49  ;;  %v1162_v2 = vsel %vm1038_vm10, %v1160_v46, %v1161_v53 }
  0xd7   : > { %1167 = vrot.lane.b32.xlu1 %v1164_v63, %s1922_s23  ;;  %1165 = vrot.lane.b32.xlu0 %v1162_v2, %s1922_s23  ;;  %v1270_v52 = vrot.slane %v1264_v22, 3 }
  0xd8   : > { %v2418_v1 = vpop.permute.xlu1 %1240  ;;  %v1215_v9 = vrot.slane %v1209_v61, 3 }
  0xd9   : > { %3059 = vst [vmem:[#allocation16_spill] sm:$0xff] %v2418_v1  ;;  %v2422_v11 = vpop.permute.xlu0 %1185  ;;  %v1266_v24 = vmul.f32 %v2418_v1, %v2249_v57 }
  0xda   : > { %3060 = vst [vmem:[#allocation17_spill] sm:$0xff] %v2422_v11  ;;  %v1211_v14 = vmul.f32 %v2422_v11, %v2249_v57  ;;  %v1217_v16 = vsel %vm1038_vm10, %v1215_v9, %v1216_v6 }
  0xdb   : > { %1220 = vrot.lane.b32.xlu0 %v1217_v16, %s1923_s30  ;;  %v1273_v53 = vrot.slane %v1266_v24, 3 }
  0xdc   : > { %v2427_v18 = vpop.permute.xlu1 %1335  ;;  %v1218_v26 = vrot.slane %v1211_v14, 3 }
  0xdd   : > { %3061 = vst [vmem:[#allocation18_spill] sm:$0xff] %v2427_v18  ;;  %v2434_v34 = vpop.permute.xlu0 %1238  ;;  %v1362_v61 = vmul.f32 %v2427_v18, %v2213_v40 }
  0xde   : > { %3062 = vst [vmem:[#allocation19_spill] sm:$0xff] %v2434_v34  ;;  %v1265_v38 = vmul.f32 %v2434_v34, %v2213_v40  ;;  %v1219_v46 = vsel %vm1038_vm10, %v1216_v6, %v1218_v26 }
  0xdf   : > { %1222 = vrot.lane.b32.xlu1 %v1219_v46, %s1923_s30  ;;  %v1368_v22 = vrot.slane %v1362_v61, 4 }
  0xe0   : > { %v2439_v49 = vpop.permute.xlu1 %1388  ;;  %v1271_v63 = vrot.slane %v1265_v38, 3 }
  0xe1   : > { %3063 = vst [vmem:[#allocation20_spill] sm:$0xff] %v2439_v49  ;;  %v2444_v2 = vpop.permute.xlu0 %1333 }
  0xe2   : > { %3064 = vst [vmem:[#allocation21_spill] sm:$0xff] %v2444_v2  ;;  %v1361_v9 = vmul.f32 %v2444_v2, %v2204_v36  ;;  %v1274_v14 = vsel %vm1038_vm10, %v1271_v63, %v1273_v53  ;;  %v1272_v16 = vsel %vm1038_vm10, %v1270_v52, %v1271_v63  ;;  %v1416_v52 = vmul.f32 %v2439_v49, %v2204_v36 }
  0xe3   : > { %1277 = vrot.lane.b32.xlu1 %v1274_v14, %s1924_s21  ;;  %1275 = vrot.lane.b32.xlu0 %v1272_v16, %s1924_s21 }
  0xe4   : > { %v2450_v6 = vpop.permute.xlu1 %1392  ;;  %v1367_v24 = vrot.slane %v1361_v9, 4 }
  0xe5   : > { %3065 = vst [vmem:[#allocation22_spill] sm:$0xff] %v2450_v6  ;;  %v2454_v26 = vpop.permute.xlu0 %1337  ;;  %v1418_v53 = vmul.f32 %v2450_v6, %v2249_v57 }
  0xe6   : > { %3066 = vst [vmem:[#allocation23_spill] sm:$0xff] %v2454_v26  ;;  %v1363_v38 = vmul.f32 %v2454_v26, %v2249_v57  ;;  %v1369_v46 = vsel %vm1288_vm6, %v1367_v24, %v1368_v22  ;;  %v1422_v24 = vrot.slane %v1416_v52, 4 }
  0xe7   : > { %1372 = vrot.lane.b32.xlu0 %v1369_v46, %s1921_s28  ;;  %v1425_v46 = vrot.slane %v1418_v53, 4 }
  0xe8   : > { %v2459_v5 = vpop.permute.xlu1 %1445  ;;  %v1370_v63 = vrot.slane %v1363_v38, 4 }
  0xe9   : > { %3067 = vst [vmem:[#allocation24_spill] sm:$0xff] %v2459_v5  ;;  %v2466_v61 = vpop.permute.xlu0 %1390  ;;  %v1472_v2 = vmul.f32 %v2459_v5, %v2213_v40 }
  0xea   : > { %3068 = vst [vmem:[#allocation25_spill] sm:$0xff] %v2466_v61  ;;  %v1417_v9 = vmul.f32 %v2466_v61, %v2213_v40  ;;  %v1371_v14 = vsel %vm1288_vm6, %v1368_v22, %v1370_v63 }
  0xeb   : > { %1374 = vrot.lane.b32.xlu1 %v1371_v14, %s1921_s28  ;;  %v1478_v22 = vrot.slane %v1472_v2, 4 }
  0xec   : > { %v2471_v16 = vpop.permute.xlu1 %1498  ;;  %v1423_v26 = vrot.slane %v1417_v9, 4 }
  0xed   : > { %3069 = vst [vmem:[#allocation26_spill] sm:$0xff] %v2471_v16  ;;  %v2476_v18 = vpop.permute.xlu0 %1443 }
  0xee   : > { %3070 = vst [vmem:[#allocation27_spill] sm:$0xff] %v2476_v18  ;;  %v1471_v38 = vmul.f32 %v2476_v18, %v2204_v36  ;;  %v1426_v6 = vsel %vm1288_vm6, %v1423_v26, %v1425_v46  ;;  %v1424_v43 = vsel %vm1288_vm6, %v1422_v24, %v1423_v26  ;;  %v1526_v26 = vmul.f32 %v2471_v16, %v2204_v36 }
  0xef   : > { %1429 = vrot.lane.b32.xlu1 %v1426_v6, %s1922_s23  ;;  %1427 = vrot.lane.b32.xlu0 %v1424_v43, %s1922_s23 }
  0xf0   : > { %v1477_v52 = vrot.slane %v1471_v38, 4  ;;  %v2484_v53 = vpop.permute.xlu1 %1502  ;;  %v1532_v38 = vrot.slane %v1526_v26, 4 }
  0xf1   : > { %3071 = vst [vmem:[#allocation28_spill] sm:$0xff] %v2484_v53  ;;  %v2486_v63 = vpop.permute.xlu0 %1447  ;;  %v1528_v6 = vmul.f32 %v2484_v53, %v2249_v57 }
  0xf2   : > { %3072 = vst [vmem:[#allocation29_spill] sm:$0xff] %v2486_v63  ;;  %v1473_v9 = vmul.f32 %v2486_v63, %v2249_v57  ;;  %v1479_v14 = vsel %vm1288_vm6, %v1477_v52, %v1478_v22 }
  0xf3   : > { %1482 = vrot.lane.b32.xlu0 %v1479_v14, %s1923_s30  ;;  %v1535_v52 = vrot.slane %v1528_v6, 4 }
  0xf4   : > { %v1480_v43 = vrot.slane %v1473_v9, 4 }
  0xf5   : > { %v2496_v2 = vpop.permute.xlu0 %1500 }
  0xf6   : > { %3073 = vst [vmem:[#allocation30_spill] sm:$0xff] %v2496_v2  ;;  %v1527_v24 = vmul.f32 %v2496_v2, %v2213_v40  ;;  %v1481_v46 = vsel %vm1288_vm6, %v1478_v22, %v1480_v43 }
  0xf7   : > { %1484 = vrot.lane.b32.xlu1 %v1481_v46, %s1923_s30 }
  0xf8   : > { %v1533_v63 = vrot.slane %v1527_v24, 4  ;;  %v1781_v24 = vld [vmem:[%s3010_s2 + $0x58] sm:$0xff] }
  0xfa   : > { %v1536_v14 = vsel %vm1288_vm6, %v1533_v63, %v1535_v52  ;;  %v1534_v1 = vsel %vm1288_vm6, %v1532_v38, %v1533_v63  ;;  %v2512_v38 = vrot.slane %v1781_v24, 7  ;;  %v2517_v52 = vld [vmem:[%s3010_s2 + $0x8] sm:$0xff] }
  0xfb   : > { %1539 = vrot.lane.b32.xlu1 %v1536_v14, %s1924_s21  ;;  %1537 = vrot.lane.b32.xlu0 %v1534_v1, %s1924_s21  ;;  %v1780_v1 = vld [vmem:[%s3010_s2 + $0x50] sm:$0xff]  ;;  %3074 = vst [vmem:[#allocation31_spill] sm:$0xff] %v2517_v52  ;;  %v2522_v14 = vld [vmem:[%s3010_s2] sm:$0xff]  ;;  %v353_v28 = vmul.f32 %v2517_v52, %v2213_v40 }
  0xfc   : > { %3075 = vst [vmem:[#allocation32_spill] sm:$0xff] %v2522_v14  ;;  %v2524_v55 = vrot.slane %v1780_v1, 7  ;;  %v352_v2 = vmul.f32 %v2522_v14, %v2204_v36  ;;  %v524_v52 = vmul.f32 %v2512_v38, %v2249_v57 }
  0xfe   : > { %v2531_v24 = vsel %vm499_vm2, %v2524_v55, %v2512_v38  ;;  %v522_v12 = vmul.f32 %v2524_v55, %v2204_v36  ;;  %v531_v51 = vrot.slane %v524_v52, 1  ;;  %v1810_v52 = vld [vmem:[%s3010_s2 + $0x140] sm:$0xff] }
  0xff   : > { %v523_v49 = vmul.f32 %v2531_v24, %v2213_v40 }
 0x102   : > { %v382_v9 = vpop.permute.xlu0 %381 }
 0x103   : > { %v387_v1 = vadd.f32 %v382_v9, %v352_v2  ;;  %v1791_v2 = vld [vmem:[%s3010_s2 + $0xa8] sm:$0xff] }
 0x106   : > { %v384_v53 = vpop.permute.xlu1 %383  ;;  %v417_v34 = vpop.permute.xlu0 %416 }
 0x107   : > { %v388_v18 = vadd.f32 %v384_v53, %v353_v28  ;;  %v422_v15 = vadd.f32 %v417_v34, %v387_v1  ;;  %v529_v53 = vrot.slane %v523_v49, 1  ;;  %v2553_v34 = vrot.slane %v1791_v2, 6 }
 0x10a   : > { %v419_v59 = vpop.permute.xlu1 %418  ;;  %v452_v11 = vpop.permute.xlu0 %451 }
 0x10b   : > { %v423_v61 = vadd.f32 %v419_v59, %v388_v18  ;;  %v457_v28 = vadd.f32 %v452_v11, %v422_v15  ;;  %v528_v18 = vrot.slane %v522_v12, 1  ;;  %v532_v15 = vsel %vm512_vm8, %v529_v53, %v531_v51 }
 0x10d   : > { %v530_v11 = vsel %vm512_vm8, %v528_v18, %v529_v53  ;;  %v787_v18 = vmul.f32 %v2553_v34, %v2249_v57 }
 0x10e   : > { %v454_v21 = vpop.permute.xlu1 %453  ;;  %v487_v22 = vpop.permute.xlu0 %486 }
 0x10f   : > { %v458_v42 = vadd.f32 %v454_v21, %v423_v61  ;;  %v492_v59 = vadd.f32 %v487_v22, %v457_v28  ;;  %v1790_v21 = vld [vmem:[%s3010_s2 + $0xa0] sm:$0xff]  ;;  %v1801_v22 = vld [vmem:[%s3010_s2 + $0xf8] sm:$0xff]  ;;  %v1811_v28 = vld [vmem:[%s3010_s2 + $0x148] sm:$0xff] }
 0x110   : > { %v2557_v49 = vrot.slane %v1790_v21, 6 }
 0x111   : > { %v535_v61 = vadd.f32 %v530_v11, %v492_v59 }
 0x112   : > { %v489_v43 = vpop.permute.xlu1 %488  ;;  %v585_v46 = vpop.permute.xlu0 %584  ;;  %v2572_v51 = vsel %vm762_vm4, %v2557_v49, %v2553_v34 }
 0x113   : > { %v493_v9 = vadd.f32 %v489_v43, %v458_v42  ;;  %v1800_v42 = vld [vmem:[%s3010_s2 + $0xf0] sm:$0xff]  ;;  %v590_v59 = vadd.f32 %v585_v46, %v535_v61  ;;  %v786_v21 = vmul.f32 %v2572_v51, %v2213_v40  ;;  %v785_v46 = vmul.f32 %v2557_v49, %v2204_v36 }
 0x114   : > { %v2584_v2 = vrot.slane %v1800_v42, 5 }
 0x116   : > { %v587_v26 = vpop.permute.xlu1 %586 }
 0x119   : > { %v640_v6 = vpop.permute.xlu0 %639 }
 0x11a   : > { %v642_v63 = vpop.permute.xlu1 %641  ;;  %v645_v11 = vadd.f32 %v640_v6, %v590_v59 }
 0x11d   : > { %v695_v16 = vpop.permute.xlu0 %694 }
 0x11e   : > { %v700_v6 = vadd.f32 %v695_v16, %v645_v11 }
 0x121   : > { %v697_v10 = vpop.permute.xlu1 %696 }
 0x125   : > { %v2535_v4 = vpop.permute.xlu1 %751  ;;  %v2537_v5 = vpop.permute.xlu0 %749 }
 0x126   : > { %v755_v16 = vadd.f32 %v2537_v5, %v700_v6 }
 0x129   : > { %v326_v25 = vpop.permute.xlu1 %325  ;;  %v324_v14 = vpop.permute.xlu0 %323 }
 0x12a   : > { %331 = vst.msk [vmem:[#allocation2 + $0xa] sm:$0xff] %vm329_vm7, %v326_v25  ;;  %330 = vst.msk [vmem:[#allocation2 + $0x2] sm:$0xff] %vm329_vm7, %v324_v14  ;;  %v536_v25 = vadd.f32 %v532_v15, %v493_v9  ;;  %v2586_v9 = vrot.slane %v1801_v22, 5 }
 0x12c   : > { %v591_v53 = vadd.f32 %v587_v26, %v536_v25  ;;  %v2596_v26 = vrot.slane %v1811_v28, 4  ;;  %v794_v28 = vrot.slane %v787_v18, 2 }
 0x12d   : > { %v848_v15 = vpop.permute.xlu0 %847  ;;  %v850_v22 = vpop.permute.xlu1 %849 }
 0x131   : > { %v2565_v43 = vld [vmem:[#allocation2] sm:$0xff]  ;;  %v2567_v12 = vld [vmem:[#allocation2 + $0x8] sm:$0xff]  ;;  %v903_v18 = vpop.permute.xlu0 %902 }
 0x132   : > { %v366_v14 = vmul.f32 %v2195_v31, %v2567_v12  ;;  %v365_v1 = vmul.f32 %v2191_v29, %v2565_v43  ;;  %v2594_v29 = vrot.slane %v1810_v52, 4  ;;  %v646_v31 = vadd.f32 %v642_v63, %v591_v53 }
 0x133   : > { %v401_v25 = vmul.f32 %v2199_v33, %v2567_v12  ;;  %v400_v61 = vmul.f32 %v2206_v37, %v2565_v43  ;;  %v2607_v52 = vsel %vm1025_vm5, %v2584_v2, %v2586_v9  ;;  %v1048_v63 = vmul.f32 %v2584_v2, %v2204_v36 }
 0x134   : > { %371 = vrot.lane.b32.xlu1 %v366_v14, %s1921_s28  ;;  %369 = vrot.lane.b32.xlu0 %v365_v1, %s1921_s28  ;;  %v701_v42 = vadd.f32 %v697_v10, %v646_v31  ;;  %v2611_v14 = vld [vmem:[#allocation2 + $0x10] sm:$0xf]  ;;  %v792_v1 = vrot.slane %v786_v21, 2  ;;  %v2617_v33 = vmul.f32 %v2594_v29, %v2204_v36  ;;  %v2623_v10 = vsel %vm1288_vm6, %v2594_v29, %v2596_v26 }
 0x135   : > { %v791_v53 = vrot.slane %v785_v46, 2  ;;  %v436_v59 = vmul.f32 %v2202_v35, %v2567_v12  ;;  %v435_v21 = vmul.f32 %v2215_v41, %v2565_v43  ;;  %v2632_v36 = vmul.f32 %v2607_v52, %v2213_v40 }
 0x136   : > { %v756_v37 = vadd.f32 %v2535_v4, %v701_v42  ;;  %v555_v4 = vmul.f32 %v2221_v44, %v2567_v12  ;;  %v556_v31 = vmul.f32 %v2251_v58, %v2611_v14  ;;  %v554_v5 = vmul.f32 %v2237_v50, %v2565_v43 }
 0x137   : > { %v795_v11 = vsel %vm775_vm9, %v792_v1, %v794_v28  ;;  %v1054_v35 = vrot.slane %v1048_v63, 3  ;;  %v1050_v41 = vmul.f32 %v2586_v9, %v2249_v57  ;;  %v1316_v46 = vrot.slane %v2617_v33, 4 }
 0x138   : > { %406 = vrot.lane.b32.xlu1 %v401_v25, %s1922_s23  ;;  %404 = vrot.lane.b32.xlu0 %v400_v61, %s1922_s23  ;;  %v799_v25 = vadd.f32 %v795_v11, %v756_v37  ;;  %v793_v44 = vsel %vm775_vm9, %v791_v53, %v792_v1  ;;  %v905_v61 = vpop.permute.xlu1 %904  ;;  %v610_v58 = vmul.f32 %v2266_v3, %v2567_v12  ;;  %v1055_v33 = vrot.slane %v2632_v36, 3 }
 0x139   : > { %v611_v50 = vmul.f32 %v2245_v54, %v2611_v14  ;;  %v798_v42 = vadd.f32 %v793_v44, %v755_v16  ;;  %v471_v6 = vmul.f32 %v2210_v39, %v2567_v12  ;;  %v470_v63 = vmul.f32 %v2225_v45, %v2565_v43  ;;  %v958_v45 = vpop.permute.xlu0 %957 }
 0x13a   : > { %v609_v28 = vmul.f32 %v2231_v48, %v2565_v43  ;;  %v561_v1 = vrot.slane %v555_v4, 1  ;;  %v563_v37 = vrot.slane %v556_v31, 1  ;;  %v560_v53 = vrot.slane %v554_v5, 1 }
 0x13b   : > { %v853_v3 = vadd.f32 %v848_v15, %v798_v42  ;;  %v1057_v54 = vrot.slane %v1050_v41, 3  ;;  %v2662_v39 = vmul.f32 %v2623_v10, %v2213_v40  ;;  %v618_v48 = vrot.slane %v611_v50, 1 }
 0x13c   : > { %441 = vrot.lane.b32.xlu1 %v436_v59, %s1923_s30  ;;  %439 = vrot.lane.b32.xlu0 %v435_v21, %s1923_s30  ;;  %v854_v59 = vadd.f32 %v850_v22, %v799_v25  ;;  %v960_v16 = vpop.permute.xlu1 %959  ;;  %v616_v21 = vrot.slane %v610_v58, 1  ;;  %v665_v36 = vmul.f32 %v2258_v62, %v2567_v12  ;;  %v666_v22 = vmul.f32 %v2286_v20, %v2611_v14 }
 0x13d   : > { %v908_v15 = vadd.f32 %v903_v18, %v853_v3  ;;  %v615_v4 = vrot.slane %v609_v28, 1  ;;  %v664_v31 = vmul.f32 %v2276_v13, %v2565_v43  ;;  %v720_v5 = vmul.f32 %v2302_v27, %v2567_v12  ;;  %v1013_v18 = vpop.permute.xlu0 %1012 }
 0x13e   : > { %v909_v40 = vadd.f32 %v905_v61, %v854_v59  ;;  %v564_v11 = vsel %vm512_vm8, %v561_v1, %v563_v37  ;;  %v562_v41 = vsel %vm512_vm8, %v560_v53, %v561_v1  ;;  %v721_v25 = vmul.f32 %v2282_v17, %v2611_v14 }
 0x13f   : > { %v963_v62 = vadd.f32 %v958_v45, %v908_v15  ;;  %v1056_v44 = vsel %vm1038_vm10, %v1054_v35, %v1055_v33  ;;  %v1317_v13 = vrot.slane %v2662_v39, 4  ;;  %v2682_v20 = vmul.f32 %v2596_v26, %v2249_v57  ;;  %v3095_v39 = vld [vmem:[#allocation16_spill] sm:$0xff] }
 0x140   : > { %476 = vrot.lane.b32.xlu1 %v471_v6, %s1924_s21  ;;  %474 = vrot.lane.b32.xlu0 %v470_v63, %s1924_s21  ;;  %v964_v27 = vadd.f32 %v960_v16, %v909_v40  ;;  %v619_v61 = vsel %vm512_vm8, %v616_v21, %v618_v48  ;;  %v671_v58 = vrot.slane %v665_v36, 1  ;;  %v673_v50 = vrot.slane %v666_v22, 1  ;;  %v1015_v63 = vpop.permute.xlu1 %1014  ;;  %v3076_v40 = vld [vmem:[#allocation7_spill] sm:$0xff] }
 0x141   : > { %v617_v17 = vsel %vm512_vm8, %v615_v4, %v616_v21  ;;  %v670_v42 = vrot.slane %v664_v31, 1  ;;  %v726_v35 = vrot.slane %v720_v5, 1  ;;  %v719_v6 = vmul.f32 %v2271_v8, %v2565_v43  ;;  %v1111_v48 = vpop.permute.xlu0 %1110 }
 0x142   : > { %v728_v28 = vrot.slane %v721_v25, 1  ;;  %v818_v1 = vmul.f32 %v2291_v23, %v2567_v12  ;;  %v819_v57 = vmul.f32 %v2324_v60, %v2611_v14  ;;  %v817_v37 = vmul.f32 %v2310_v47, %v2565_v43 }
 0x143   : > { %v1018_v53 = vadd.f32 %v1013_v18, %v963_v62  ;;  %v873_v59 = vmul.f32 %v2336_v7, %v2567_v12  ;;  %v874_v8 = vmul.f32 %v2318_v56, %v2611_v14  ;;  %v1058_v3 = vsel %vm1038_vm10, %v1055_v33, %v1057_v54  ;;  %v3078_v18 = vld [vmem:[#allocation4_spill] sm:$0xff] }
 0x144   : > { %567 = vrot.lane.b32.xlu1 %v564_v11, %s1921_s28  ;;  %565 = vrot.lane.b32.xlu0 %v562_v41, %s1921_s28  ;;  %v674_v23 = vsel %vm512_vm8, %v671_v58, %v673_v50  ;;  %v2705_v60 = vsel %vm1288_vm6, %v1316_v46, %v1317_v13  ;;  %v1319_v47 = vrot.slane %v2682_v20, 4  ;;  %v1019_v45 = vadd.f32 %v1015_v63, %v964_v27  ;;  %v3077_v41 = vld [vmem:[#allocation5_spill] sm:$0xff] }
 0x145   : > { %v672_v16 = vsel %vm512_vm8, %v670_v42, %v671_v58  ;;  %v725_v21 = vrot.slane %v719_v6, 1  ;;  %v872_v7 = vmul.f32 %v2307_v32, %v2565_v43  ;;  %v1113_v56 = vpop.permute.xlu1 %1112  ;;  %v729_v33 = vsel %vm512_vm8, %v726_v35, %v728_v28  ;;  %v3081_v28 = vld [vmem:[#allocation25_spill] sm:$0xff] }
 0x146   : > { %v824_v54 = vrot.slane %v818_v1, 2  ;;  %v826_v36 = vrot.slane %v819_v57, 2  ;;  %v823_v22 = vrot.slane %v817_v37, 2  ;;  %v1061_v15 = vadd.f32 %v1056_v44, %v1018_v53 }
 0x147   : > { %v879_v46 = vrot.slane %v873_v59, 2  ;;  %v881_v4 = vrot.slane %v874_v8, 2  ;;  %v928_v31 = vmul.f32 %v2328_v0, %v2567_v12  ;;  %v929_v32 = vmul.f32 %v2358_v30, %v2611_v14 }
 0x148   : > { %622 = vrot.lane.b32.xlu1 %v619_v61, %s1922_s23  ;;  %620 = vrot.lane.b32.xlu0 %v617_v17, %s1922_s23  ;;  %v927_v5 = vmul.f32 %v2348_v19, %v2565_v43  ;;  %v983_v11 = vmul.f32 %v3076_v40, %v2567_v12  ;;  %v984_v25 = vmul.f32 %v3077_v41, %v2611_v14  ;;  %v878_v27 = vrot.slane %v872_v7, 2  ;;  %v3079_v19 = vld [vmem:[#allocation6_spill] sm:$0xff]  ;;  %v3080_v17 = vld [vmem:[#allocation11_spill] sm:$0xff] }
 0x149   : > { %v1062_v62 = vadd.f32 %v1058_v3, %v1019_v45  ;;  %v727_v44 = vsel %vm512_vm8, %v725_v21, %v726_v35  ;;  %v982_v61 = vmul.f32 %v3078_v18, %v2565_v43  ;;  %v1166_v0 = vpop.permute.xlu0 %1165  ;;  %v827_v58 = vsel %vm775_vm9, %v824_v54, %v826_v36  ;;  %v1168_v57 = vpop.permute.xlu1 %1167 }
 0x14a   : > { %v825_v30 = vsel %vm775_vm9, %v823_v22, %v824_v54  ;;  %v2731_v50 = vmul.f32 %v3079_v19, %v2567_v12  ;;  %v1082_v42 = vmul.f32 %v3080_v17, %v2611_v14  ;;  %v1116_v6 = vadd.f32 %v1111_v48, %v1061_v15  ;;  %v3083_v54 = vld [vmem:[#allocation24_spill] sm:$0xff]  ;;  %v3084_v22 = vld [vmem:[#allocation9_spill] sm:$0xff]  ;;  %v3088_v19 = vld [vmem:[#allocation10_spill] sm:$0xff] }
 0x14b   : > { %v882_v35 = vsel %vm775_vm9, %v879_v46, %v881_v4  ;;  %v934_v63 = vrot.slane %v928_v31, 2  ;;  %v2740_v1 = vmul.f32 %v3081_v28, %v2567_v12  ;;  %v936_v37 = vrot.slane %v929_v32, 2  ;;  %v3085_v4 = vld [vmem:[#allocation27_spill] sm:$0xff] }
 0x14c   : > { %677 = vrot.lane.b32.xlu1 %v674_v23, %s1923_s30  ;;  %675 = vrot.lane.b32.xlu0 %v672_v16, %s1923_s30  ;;  %v933_v53 = vrot.slane %v927_v5, 2  ;;  %v989_v59 = vrot.slane %v983_v11, 2  ;;  %v991_v8 = vrot.slane %v984_v25, 2  ;;  %v880_v3 = vsel %vm775_vm9, %v878_v27, %v879_v46  ;;  %v3082_v16 = vld [vmem:[#allocation20_spill] sm:$0xff]  ;;  %v3087_v27 = vld [vmem:[#allocation13_spill] sm:$0xff] }
 0x14d   : > { %v988_v23 = vrot.slane %v982_v61, 2  ;;  %v1404_v45 = vrot.slane %v2740_v1, 4  ;;  %v1397_v21 = vmul.f32 %v3082_v16, %v2565_v43  ;;  %v1117_v7 = vadd.f32 %v1113_v56, %v1062_v62  ;;  %v3086_v56 = vld [vmem:[#allocation30_spill] sm:$0xff]  ;;  %v1221_v5 = vpop.permute.xlu0 %1220 }
 0x14e   : > { %v1087_v48 = vrot.slane %v2731_v50, 3  ;;  %v2749_v36 = vmul.f32 %v3083_v54, %v2567_v12  ;;  %v2755_v15 = vmul.f32 %v3084_v22, %v2565_v43  ;;  %v1452_v31 = vmul.f32 %v3085_v4, %v2565_v43 }
 0x14f   : > { %v1403_v46 = vrot.slane %v1397_v21, 4  ;;  %v2761_v32 = vmul.f32 %v3086_v56, %v2567_v12  ;;  %v937_v11 = vsel %vm775_vm9, %v934_v63, %v936_v37  ;;  %v935_v41 = vsel %vm775_vm9, %v933_v53, %v934_v63  ;;  %v3089_v63 = vld [vmem:[#allocation26_spill] sm:$0xff] }
 0x150   : > { %732 = vrot.lane.b32.xlu1 %v729_v33, %s1924_s21  ;;  %730 = vrot.lane.b32.xlu0 %v727_v44, %s1924_s21  ;;  %v1089_v33 = vrot.slane %v1082_v42, 3  ;;  %v992_v25 = vsel %vm775_vm9, %v989_v59, %v991_v8  ;;  %v1459_v62 = vrot.slane %v2749_v36, 4  ;;  %v990_v44 = vsel %vm775_vm9, %v988_v23, %v989_v59  ;;  %v3090_v23 = vld [vmem:[#allocation8_spill] sm:$0xff]  ;;  %v1893_v36 = vld [vmem:[%s3011_s3 + $0x28] sm:$0xff]  }
 0x151   : > { %v1223_v40 = vpop.permute.xlu1 %1222  ;;  %v2770_v18 = vmul.f32 %v3087_v27, %v2567_v12  ;;  %v2775_v61 = vsel %vm1288_vm6, %v1403_v46, %v1404_v45  ;;  %v2779_v17 = vmul.f32 %v3088_v19, %v2611_v14  ;;  %v1514_v42 = vrot.slane %v2761_v32, 4  ;;  %v1894_v32 = vld [vmem:[%s3011_s3 + $0x30] sm:$0xff]  }
 0x152   : > { %v1507_v28 = vmul.f32 %v3089_v63, %v2565_v43  ;;  %v1172_v37 = vadd.f32 %v1168_v57, %v1117_v7  ;;  %v1090_v53 = vsel %vm1038_vm10, %v1087_v48, %v1089_v33  ;;  %v2797_v57 = vmul.f32 %v3090_v23, %v2565_v43 }
 0x153   : > { %v507_v7 = vmul.f32 %v2531_v24, %v2567_v12  ;;  %v508_v33 = vmul.f32 %v2512_v38, %v2611_v14  ;;  %v506_v54 = vmul.f32 %v2524_v55, %v2565_v43  ;;  %v770_v46 = vmul.f32 %v2572_v51, %v2567_v12 }
 0x154   : > { %830 = vrot.lane.b32.xlu1 %v827_v58, %s1921_s28  ;;  %828 = vrot.lane.b32.xlu0 %v825_v30, %s1921_s28  ;;  %v1458_v58 = vrot.slane %v1452_v31, 4  ;;  %v1171_v30 = vadd.f32 %v1166_v0, %v1116_v6  ;;  %v1086_v0 = vrot.slane %v2755_v15, 3  ;;  %v1513_v16 = vrot.slane %v1507_v28, 4 }
 0x155   : > { %v1276_v8 = vpop.permute.xlu0 %1275  ;;  %v1227_v21 = vadd.f32 %v1223_v40, %v1172_v37  ;;  %v1278_v22 = vpop.permute.xlu1 %1277  ;;  %v771_v4 = vmul.f32 %v2553_v34, %v2611_v14  ;;  %v769_v24 = vmul.f32 %v2557_v49, %v2565_v43  ;;  %v514_v55 = vrot.slane %v507_v7, 1 }
 0x156   : > { %v2793_v6 = vsel %vm1288_vm6, %v1458_v58, %v1459_v62  ;;  %v1226_v59 = vadd.f32 %v1221_v5, %v1171_v30  ;;  %v2812_v15 = vsel %vm1288_vm6, %v1513_v16, %v1514_v42  ;;  %v516_v38 = vrot.slane %v508_v33, 1 }
 0x157   : > { %v513_v31 = vrot.slane %v506_v54, 1  ;;  %v1033_v56 = vmul.f32 %v2607_v52, %v2567_v12  ;;  %v777_v5 = vrot.slane %v770_v46, 2  ;;  %v779_v40 = vrot.slane %v771_v4, 2 }
 0x158   : > { %885 = vrot.lane.b32.xlu1 %v882_v35, %s1922_s23  ;;  %883 = vrot.lane.b32.xlu0 %v880_v3, %s1922_s23  ;;  %v3091_v35 = vld [vmem:[#allocation12_spill] sm:$0xff]  ;;  %v776_v27 = vrot.slane %v769_v24, 2  ;;  %v1034_v51 = vmul.f32 %v2586_v9, %v2611_v14  ;;  %v1281_v34 = vadd.f32 %v1276_v8, %v1226_v59  ;;  %v2827_v58 = vsel %vm512_vm8, %v514_v55, %v516_v38 }
 0x159   : > { %v2801_v3 = vmul.f32 %v3091_v35, %v2567_v12  ;;  %v2830_v49 = vsel %vm512_vm8, %v513_v31, %v514_v55  ;;  %v2833_v19 = vsel %vm775_vm9, %v777_v5, %v779_v40  ;;  %v1032_v9 = vmul.f32 %v2584_v2, %v2565_v43  ;;  %v3092_v35 = vld [vmem:[#allocation17_spill] sm:$0xff] }
 0x15a   : > { %v2836_v52 = vsel %vm775_vm9, %v776_v27, %v777_v5  ;;  %v1042_v63 = vrot.slane %v1034_v51, 3  ;;  %v1142_v28 = vrot.slane %v2770_v18, 3  ;;  %v1296_v37 = vmul.f32 %v2623_v10, %v2567_v12 }
 0x15b   : > { %v1297_v59 = vmul.f32 %v2596_v26, %v2611_v14  ;;  %v1295_v8 = vmul.f32 %v2594_v29, %v2565_v43  ;;  %v1088_v23 = vsel %vm1038_vm10, %v1086_v0, %v1087_v48  ;;  %v1144_v2 = vrot.slane %v2779_v17, 3  ;;  %v3093_v29 = vld [vmem:[#allocation15_spill] sm:$0xff] }
 0x15c   : > { %940 = vrot.lane.b32.xlu1 %v937_v11, %s1923_s30  ;;  %938 = vrot.lane.b32.xlu0 %v935_v41, %s1923_s30  ;;  %v1040_v11 = vrot.slane %v1033_v56, 3  ;;  %v1373_v41 = vpop.permute.xlu0 %1372  ;;  %v1282_v18 = vadd.f32 %v1278_v22, %v1227_v21  ;;  %v1192_v10 = vmul.f32 %v3092_v35, %v2611_v14  ;;  %v1302_v16 = vrot.slane %v1296_v37, 4  ;;  %v3094_v22 = vld [vmem:[#allocation19_spill] sm:$0xff] }
 0x15d   : > { %v1375_v30 = vpop.permute.xlu1 %1374  ;;  %v1304_v7 = vrot.slane %v1297_v59, 4  ;;  %v1141_v33 = vrot.slane %v2797_v57, 3  ;;  %v1190_v50 = vmul.f32 %v3093_v29, %v2565_v43  ;;  %v1301_v17 = vrot.slane %v1295_v8, 4  ;;  %v3099_v8 = vld [vmem:[#allocation21_spill] sm:$0xff] }
 0x15e   : > { %v1323_v0 = vadd.f32 %v2705_v60, %v1281_v34  ;;  %v1320_v57 = vsel %vm1288_vm6, %v1317_v13, %v1319_v47  ;;  %v1246_v46 = vmul.f32 %v3094_v22, %v2567_v12  ;;  %v1197_v24 = vrot.slane %v2801_v3, 3  ;;  %v3096_v13 = vld [vmem:[#allocation14_spill] sm:$0xff] }
 0x15f   : > { %v2868_v21 = vsel %vm1288_vm6, %v1302_v16, %v1304_v7  ;;  %v2878_v4 = vsel %vm1288_vm6, %v1301_v17, %v1302_v16  ;;  %v1324_v60 = vadd.f32 %v1320_v57, %v1282_v18  ;;  %v1199_v55 = vrot.slane %v1192_v10, 3  ;;  %v3097_v3 = vld [vmem:[#allocation18_spill] sm:$0xff] }
 0x160   : > { %995 = vrot.lane.b32.xlu1 %v992_v25, %s1924_s21  ;;  %993 = vrot.lane.b32.xlu0 %v990_v44, %s1924_s21  ;;  %v2854_v25 = vsel %vm1038_vm10, %v1040_v11, %v1042_v63  ;;  %v1039_v44 = vrot.slane %v1032_v9, 3  ;;  %v1143_v38 = vsel %vm1038_vm10, %v1141_v33, %v1142_v28  ;;  %v1196_v20 = vrot.slane %v1190_v50, 3  ;;  %v1554_v50 = vld [vmem:[%s3014_s6 + $0x8] sm:$0xff] }
 0x161   : > { %v1428_v26 = vpop.permute.xlu0 %1427  ;;  %v1430_v54 = vpop.permute.xlu1 %1429  ;;  %v1247_v31 = vmul.f32 %v3095_v39, %v2611_v14  ;;  %v1245_v47 = vmul.f32 %v3096_v13, %v2565_v43  ;;  %v1378_v56 = vadd.f32 %v1373_v41, %v1323_v0  ;;  %v1379_v5 = vadd.f32 %v1375_v30, %v1324_v60 }
 0x162   : > { %v2862_v48 = vsel %vm1038_vm10, %v1039_v44, %v1040_v11  ;;  %v1252_v51 = vrot.slane %v1246_v46, 3  ;;  %v1343_v34 = vmul.f32 %v3097_v3, %v2567_v12  ;;  %v1200_v9 = vsel %vm1038_vm10, %v1197_v24, %v1199_v55  ;;  %v1889_v46 = vld [vmem:[%s3011_s3 + $0x8] sm:$0xff]  }
 0x163   : > { %v1434_v11 = vadd.f32 %v1430_v54, %v1379_v5  ;;  %v1433_v63 = vadd.f32 %v1428_v26, %v1378_v56  ;;  %v1198_v41 = vsel %vm1038_vm10, %v1196_v20, %v1197_v24  ;;  %v1254_v30 = vrot.slane %v1247_v31, 3  ;;  %v3101_v54 = vld [vmem:[#allocation22_spill] sm:$0xff]  ;;  %v1558_v24 = vld [vmem:[%s3013_s5 + $0x8] sm:$0xff]  ;;  %v3102_v56 = vld [vmem:[#allocation29_spill] sm:$0xff] }
 0x164   : > { %1093 = vrot.lane.b32.xlu1 %v1090_v53, %s1921_s28  ;;  %1091 = vrot.lane.b32.xlu0 %v1088_v23, %s1921_s28  ;;  %v1145_v53 = vsel %vm1038_vm10, %v1142_v28, %v1144_v2  ;;  %v3098_v28 = vld [vmem:[#allocation23_spill] sm:$0xff]  ;;  %v1251_v59 = vrot.slane %v1245_v47, 3  ;;  %v1342_v23 = vmul.f32 %v3099_v8, %v2565_v43  ;;  %v1888_v2 = vld [vmem:[%s3011_s3] sm:$0xff]   ;;  %v1349_v26 = vrot.slane %v1343_v34, 4 }
 0x165   : > { %v1483_v40 = vpop.permute.xlu0 %1482  ;;  %v1344_v37 = vmul.f32 %v3098_v28, %v2611_v14  ;;  %1845 = vmatpush3.bf16.msra.mxu0 %v1888_v2  ;;  %v3100_v29 = vmov 0.0   ;;  %v1255_v17 = vsel %vm1038_vm10, %v1252_v51, %v1254_v30  ;;  %v1399_v22 = vmul.f32 %v3101_v54, %v2611_v14  ;;  %v1557_v20 = vld [vmem:[%s3013_s5] sm:$0xff] }
 0x166   : > { %v1488_v44 = vadd.f32 %v1483_v40, %v1433_v63  ;;  %1846 = vmatprep.subr.bf16.mxu0 %v3100_v29  ;;  %v1253_v0 = vsel %vm1038_vm10, %v1251_v59, %v1252_v51  ;;  %v1348_v57 = vrot.slane %v1342_v23, 4  ;;  %v1454_v5 = vmul.f32 %v3102_v56, %v2611_v14  ;;  %v1890_v51 = vld [vmem:[%s3011_s3 + $0x10] sm:$0xff]   ;;  %1860 = vmatprep.mubr.msk.bf16.mxu0 %vm1925_vm11, %v3100_v29 }
 0x167   : > { %v1351_v33 = vrot.slane %v1344_v37, 4  ;;  %v1406_v47 = vrot.slane %v1399_v22, 4  ;;  %v1891_v37 = vld [vmem:[%s3011_s3 + $0x18] sm:$0xff]  }
 0x168   : > { %1148 = vrot.lane.b32.xlu1 %v1145_v53, %s1922_s23  ;;  %1146 = vrot.lane.b32.xlu0 %v1143_v38, %s1922_s23  ;;  %v1553_v53 = vld [vmem:[%s3014_s6] sm:$0xff]  ;;  %v1350_v13 = vsel %vm1288_vm6, %v1348_v57, %v1349_v26  ;;  %v1461_v63 = vrot.slane %v1454_v5, 4 }
 0x169   : > { %v1485_v27 = vpop.permute.xlu1 %1484  ;;  %1847 = vmatpush3.bf16.msra.mxu0 %v1889_v46  ;;  %v1352_v39 = vsel %vm1288_vm6, %v1349_v26, %v1351_v33  ;;  %v3105_v26 = vld [vmem:[#allocation32_spill] sm:$0xff] }
 0x16a   : > { %v1489_v18 = vadd.f32 %v1485_v27, %v1434_v11  ;;  %1848 = vmatprep.subr.bf16.mxu0 %v3100_v29  ;;  %v1407_v11 = vsel %vm1288_vm6, %v1404_v45, %v1406_v47  ;;  %v1462_v1 = vsel %vm1288_vm6, %v1459_v62, %v1461_v63  ;;  %v350_v33 = vmul.f32 %v3105_v26, %v2565_v43 }
 0x16c   : > { %1203 = vrot.lane.b32.xlu1 %v1200_v9, %s1923_s30  ;;  %1201 = vrot.lane.b32.xlu0 %v1198_v41, %s1923_s30  ;;  %v3103_v9 = vld [vmem:[#allocation28_spill] sm:$0xff] }
 0x16d   : > { %v1540_v35 = vpop.permute.xlu1 %1539  ;;  %v1538_v10 = vpop.permute.xlu0 %1537  ;;  %v1509_v28 = vmul.f32 %v3103_v9, %v2611_v14  ;;  %1849 = vmatpush3.bf16.msra.mxu0 %v1890_v51  ;;  %v1892_v14 = vld [vmem:[%s3011_s3 + $0x20] sm:$0xff]  }
 0x16e   : > { %v2902_v16 = vadd.f32 %v1540_v35, %v1489_v18  ;;  %v2904_v7 = vadd.f32 %v1538_v10, %v1488_v44  ;;  %1850 = vmatprep.subr.bf16.mxu0 %v3100_v29  ;;  %v3104_v35 = vld [vmem:[#allocation31_spill] sm:$0xff] }
 0x16f   : > { %v1516_v45 = vrot.slane %v1509_v28, 4  ;;  %v351_v10 = vmul.f32 %v3104_v35, %v2567_v12 }
 0x170   : > { %v1552_v60 = vmul.f32 0.1, %v2902_v16  ;;  %1258 = vrot.lane.b32.xlu1 %v1255_v17, %s1924_s21  ;;  %1256 = vrot.lane.b32.xlu0 %v1253_v0, %s1924_s21  ;;  %v1551_v55 = vmul.f32 0.1, %v2904_v7 }
 0x171   : > { %1851 = vmatpush3.bf16.msra.mxu0 %v1891_v37 }
 0x172   : > { %v1556_v38 = vadd.f32 %v1554_v50, %v1552_v60  ;;  %v1555_v31 = vadd.f32 %v1553_v53, %v1551_v55  ;;  %1852 = vmatprep.subr.bf16.mxu0 %v3100_v29 }
 0x174   : > { %v1560_v40 = vmul.f32 %v1558_v24, %v1556_v38  ;;  %1355 = vrot.lane.b32.xlu1 %v1352_v39, %s1921_s28  ;;  %1353 = vrot.lane.b32.xlu0 %v1350_v13, %s1921_s28  ;;  %v1559_v27 = vmul.f32 %v1557_v20, %v1555_v31 }
 0x175   : > { %1853 = vmatpush3.bf16.msra.mxu0 %v1892_v14 }
 0x176   : > { %v1821_v3 = vmul.f32 -1.442695, %v1560_v40  ;;  %v1820_v34 = vmul.f32 -1.442695, %v1559_v27  ;;  %1854 = vmatprep.subr.bf16.mxu0 %v3100_v29 }
 0x178   : > { %1896 = vpow2.f32 %v1821_v3  ;;  %1410 = vrot.lane.b32.xlu1 %v1407_v11, %s1922_s23  ;;  %1408 = vrot.lane.b32.xlu0 %v2775_v61, %s1922_s23  ;;  %v1517_v61 = vsel %vm1288_vm6, %v1514_v42, %v1516_v45 }
 0x179   : > { %1898 = vpow2.f32 %v1820_v34  ;;  %1855 = vmatpush3.bf16.msra.mxu0 %v1893_v36 }
 0x17a   : > { %1856 = vmatprep.subr.bf16.mxu0 %v3100_v29 }
 0x17c   : > { %1465 = vrot.lane.b32.xlu1 %v1462_v1, %s1923_s30  ;;  %1463 = vrot.lane.b32.xlu0 %v2793_v6, %s1923_s30 }
 0x17d   : > { %1857 = vmatpush3.bf16.msra.mxu0 %v1894_v32 }
 0x17e   : > { %1858 = vmatprep.subr.bf16.mxu0 %v3100_v29 }
 0x180   : > { %1520 = vrot.lane.b32.xlu1 %v1517_v61, %s1924_s21  ;;  %1518 = vrot.lane.b32.xlu0 %v2812_v15, %s1924_s21  ;;  %v1895_v15 = vld [vmem:[%s3011_s3 + $0x38] sm:$0xff]   ;;  %s1926_s21 = smov 64  }
 0x181   : > { %1859 = vmatpush3.bf16.msra.mxu0 %v1895_v15 }
 0x182   : > { %v1897_v62 = vpop.eup %1896 }
 0x183   : > { %v1899_v6 = vpop.eup %1898  ;;  %v1568_v41 = vadd.f32 1.0, %v1897_v62 }
 0x184   : > { %v1567_v42 = vadd.f32 1.0, %v1899_v6 }
 0x185   : > { %1900 = vrcp.f32 %v1568_v41 }
 0x186   : > { %1902 = vrcp.f32 %v1567_v42 }
 0x18f   : > { %v1901_v30 = vpop.eup %1900 }
 0x190   : > { %v1903_v59 = vpop.eup %1902 }
 0x191   : > { %v1883_v8 = vpack.i.bf16 %v1901_v30, %v1903_v59 }
 0x193   : > { %1884 = vrot.lane.b32.xlu0 %v1883_v8, %s1926_s21 }
 0x1a6   : > { %v372_v23 = vpop.permute.xlu1 %371  ;;  %v370_v2 = vpop.permute.xlu0 %369 }
 0x1a7   : > { %v376_v50 = vadd.f32 %v372_v23, %v351_v10  ;;  %v375_v17 = vadd.f32 %v370_v2, %v350_v33 }
 0x1aa   : > { %v407_v44 = vpop.permute.xlu1 %406  ;;  %v405_v18 = vpop.permute.xlu0 %404 }
 0x1ab   : > { %v411_v57 = vadd.f32 %v407_v44, %v376_v50  ;;  %v410_v54 = vadd.f32 %v405_v18, %v375_v17 }
 0x1ae   : > { %v442_v0 = vpop.permute.xlu1 %441  ;;  %v440_v29 = vpop.permute.xlu0 %439 }
 0x1af   : > { %v446_v22 = vadd.f32 %v442_v0, %v411_v57  ;;  %v445_v46 = vadd.f32 %v440_v29, %v410_v54 }
 0x1b2   : > { %v477_v60 = vpop.permute.xlu1 %476  ;;  %v475_v53 = vpop.permute.xlu0 %474 }
 0x1b3   : > { %v481_v24 = vadd.f32 %v477_v60, %v446_v22  ;;  %v480_v55 = vadd.f32 %v475_v53, %v445_v46  ;;  %v1545_v53 = vmax.f32 %v2904_v7, 1e-05 }
 0x1b5   : > { %v521_v38 = vadd.f32 %v2827_v58, %v481_v24  ;;  %v520_v20 = vadd.f32 %v2830_v49, %v480_v55 }
 0x1b6   : > { %v568_v12 = vpop.permute.xlu1 %567  ;;  %v566_v39 = vpop.permute.xlu0 %565 }
 0x1b7   : > { %v572_v13 = vadd.f32 %v568_v12, %v521_v38  ;;  %v571_v47 = vadd.f32 %v566_v39, %v520_v20 }
 0x1ba   : > { %v623_v31 = vpop.permute.xlu1 %622  ;;  %v621_v43 = vpop.permute.xlu0 %620 }
 0x1bb   : > { %v627_v40 = vadd.f32 %v623_v31, %v572_v13  ;;  %v626_v27 = vadd.f32 %v621_v43, %v571_v47 }
 0x1be   : > { %v678_v56 = vpop.permute.xlu1 %677  ;;  %v676_v5 = vpop.permute.xlu0 %675 }
 0x1bf   : > { %v682_v51 = vadd.f32 %v678_v56, %v627_v40  ;;  %v681_v3 = vadd.f32 %v676_v5, %v626_v27 }
 0x1c2   : > { %v733_v34 = vpop.permute.xlu1 %732  ;;  %v731_v11 = vpop.permute.xlu0 %730 }
 0x1c3   : > { %v737_v63 = vadd.f32 %v733_v34, %v682_v51  ;;  %v736_v9 = vadd.f32 %v731_v11, %v681_v3 }
 0x1c5   : > { %v784_v58 = vadd.f32 %v2833_v19, %v737_v63  ;;  %v783_v49 = vadd.f32 %v2836_v52, %v736_v9 }
 0x1c6   : > { %v831_v28 = vpop.permute.xlu1 %830  ;;  %v829_v37 = vpop.permute.xlu0 %828 }
 0x1c7   : > { %v835_v14 = vadd.f32 %v831_v28, %v784_v58  ;;  %v834_v61 = vadd.f32 %v829_v37, %v783_v49  ;;  %v1601_v28 = vld [vmem:[%s3012_s4] sm:$0xff] }
 0x1ca   : > { %v886_v1 = vpop.permute.xlu1 %885  ;;  %v884_v45 = vpop.permute.xlu0 %883 }
 0x1cb   : > { %v890_v6 = vadd.f32 %v886_v1, %v835_v14  ;;  %v889_v41 = vadd.f32 %v884_v45, %v834_v61  ;;  %v1602_v1 = vld [vmem:[%s3012_s4 + $0x8] sm:$0xff] }
 0x1ce   : > { %v941_v36 = vpop.permute.xlu1 %940  ;;  %v939_v62 = vpop.permute.xlu0 %938 }
 0x1cf   : > { %v945_v32 = vadd.f32 %v941_v36, %v890_v6  ;;  %v944_v42 = vadd.f32 %v939_v62, %v889_v41 }
 0x1d2   : > { %v996_v15 = vpop.permute.xlu1 %995  ;;  %v994_v30 = vpop.permute.xlu0 %993 }
 0x1d3   : > { %v1000_v59 = vadd.f32 %v996_v15, %v945_v32  ;;  %v999_v8 = vadd.f32 %v994_v30, %v944_v42 }
 0x1d5   : > { %v1047_v19 = vadd.f32 %v2854_v25, %v1000_v59  ;;  %v1046_v52 = vadd.f32 %v2862_v48, %v999_v8  ;;  %v1546_v25 = vmax.f32 %v2902_v16, 1e-05 }
 0x1d6   : > { %v1094_v23 = vpop.permute.xlu1 %1093  ;;  %v1092_v2 = vpop.permute.xlu0 %1091 }
 0x1d7   : > { %v1098_v35 = vadd.f32 %v1094_v23, %v1047_v19  ;;  %v1097_v10 = vadd.f32 %v1092_v2, %v1046_v52  ;;  %1904 = vrcp.f32 %v1546_v25 }
 0x1d8   : > { %1906 = vrcp.f32 %v1545_v53 }
 0x1da   : > { %v1149_v44 = vpop.permute.xlu1 %1148  ;;  %v1147_v18 = vpop.permute.xlu0 %1146 }
 0x1db   : > { %v1153_v50 = vadd.f32 %v1149_v44, %v1098_v35  ;;  %v1152_v17 = vadd.f32 %v1147_v18, %v1097_v10 }
 0x1de   : > { %v1204_v26 = vpop.permute.xlu1 %1203  ;;  %v1202_v33 = vpop.permute.xlu0 %1201 }
 0x1df   : > { %v1208_v0 = vadd.f32 %v1204_v26, %v1153_v50  ;;  %v1207_v29 = vadd.f32 %v1202_v33, %v1152_v17 }
 0x1e2   : > { %v1259_v57 = vpop.permute.xlu1 %1258  ;;  %v1257_v54 = vpop.permute.xlu0 %1256 }
 0x1e3   : > { %v1263_v22 = vadd.f32 %v1259_v57, %v1208_v0  ;;  %v1262_v46 = vadd.f32 %v1257_v54, %v1207_v29 }
 0x1e5   : > { %v1309_v48 = vadd.f32 %v2868_v21, %v1263_v22  ;;  %v1308_v60 = vadd.f32 %v2878_v4, %v1262_v46  ;;  %v1905_v4 = vpop.eup %1904 }
 0x1e6   : > { %v1356_v24 = vpop.permute.xlu1 %1355  ;;  %v1354_v55 = vpop.permute.xlu0 %1353 }
 0x1e7   : > { %v1360_v12 = vadd.f32 %v1356_v24, %v1309_v48  ;;  %v1359_v39 = vadd.f32 %v1354_v55, %v1308_v60  ;;  %v1907_v27 = vpop.eup %1906 }
 0x1ea   : > { %v1411_v38 = vpop.permute.xlu1 %1410  ;;  %v1409_v20 = vpop.permute.xlu0 %1408 }
 0x1eb   : > { %v1415_v13 = vadd.f32 %v1411_v38, %v1360_v12  ;;  %v1414_v47 = vadd.f32 %v1409_v20, %v1359_v39 }
 0x1ee   : > { %v1466_v31 = vpop.permute.xlu1 %1465  ;;  %v1464_v43 = vpop.permute.xlu0 %1463 }
 0x1ef   : > { %v1470_v56 = vadd.f32 %v1466_v31, %v1415_v13  ;;  %v1469_v16 = vadd.f32 %v1464_v43, %v1414_v47 }
 0x1f2   : > { %v1521_v5 = vpop.permute.xlu1 %1520  ;;  %v1519_v21 = vpop.permute.xlu0 %1518 }
 0x1f3   : > { %v1525_v40 = vadd.f32 %v1521_v5, %v1470_v56  ;;  %v1524_v7 = vadd.f32 %v1519_v21, %v1469_v16 }
 0x1f5   : > { %v1550_v51 = vmul.f32 %v1905_v4, %v1525_v40  ;;  %v1549_v3 = vmul.f32 %v1907_v27, %v1524_v7 }
 0x205   : > { %v1885_v34 = vpop.permute.xlu0 %1884 }
 0x206   : > { %v1887_v11 = vunpack.i.h.bf16 %v1885_v34  ;;  %v1886_v63 = vunpack.i.l.bf16 %v1885_v34 }
 0x208   : > { %v1582_v9 = vsel %vm1581_vm12, %v1549_v3, %v1886_v63  ;;  %v1583_v58 = vsel %vm1581_vm12, %v1550_v51, %v1887_v11 }
 0x209   : > { %v1584_v49 = vpack.c.bf16 %v1583_v58, %v1582_v9 }
 0x20b   : > { %1861 = vmatmul.mubr.bf16.vlgmr.msra.gmra.mrb[0].mxu0 %v1584_v49 }
 0x2de   : > { %v1685_v37 = vpop.f32.mrb[0].mxu0 }
 0x2df   : > { %v1686_v45 = vadd.f32 %v1685_v37, %v1601_v28  ;;  %v1862_v14 = vpop.f32.mrb[1].mxu0 }
 0x2e0   : > { %v1688_v61 = vpop.f32.mrb[2].mxu0 }
 0x2e1   : > { %1692 = vst [vmem:[%s298_s18] sm:$0xff] %v1686_v45  ;;  %v1689_v36 = vadd.f32 %v1688_v61, %v1602_v1  ;;  %v1863_v62 = vpop.f32.mrb[3].mxu0 }
 0x2e3   : > { %1693 = vst [vmem:[%s298_s18 + $0x8] sm:$0xff] %v1689_v36 }
 0x2e4 PF: > { %s17_s24 = sadd.s32 1, %s1914_s24  }
 0x2e5   : > { %p14_p4 = scmp.ge.s32.totalorder %s17_s24, 4  }
 0x2e7   :  { %16 = sbr.rel (!%p14_p4) target bundleno = 1 (0x1), region = 105 }

</bundles_post_ra>
